<compile_context>
chip_gen: v7x
topology: tpu7x:2x2x1
jax: 0.10.0
libtpu: 0.0.40
codegen_flags: <defaults>
</compile_context>

<pallas_src>
import functools

import numpy as np
import jax
import jax.numpy as jnp
from jax.experimental import pallas as pl
from jax.experimental.pallas import tpu as pltpu


def _vmem_limit_bytes():
    try:
        cap = pltpu.get_tpu_info().vmem_capacity_bytes
        return int(min(cap * 3 // 4, 96 * 1024 * 1024))
    except Exception:            # conservative, works on every generation
        return 32 * 1024 * 1024


_VMEM_LIMIT = _vmem_limit_bytes()


def _dshift_spec(kd, k, m):
    """Block covering one D row at element offset (grid_d + kd)."""
    def idx(b, d):
        return (b, d + kd, 0, 0)
    return pl.BlockSpec((None, None, k, m), idx)


# ---------------------------------------------------------------------------
# Kernel 1: ConvTranspose3d(k3,s2,p1,op1) -- sub-pixel transposed GEMM.
#   Two static D-taps (ad = 0,1), (ah,aw) folded into K = 4*cin.
# ---------------------------------------------------------------------------
def _up_kernel(x0_ref, x1_ref, w_ref, b_ref, o_ref):
    # x*_ref: (4*cin, H*W) bf16 -- (ah,aw)-im2col'd input at D rows d, d+1
    # w_ref : (2, 8*oc, 4*cin) bf16    b_ref: (8*oc, 1) f32
    # o_ref : (8*oc, H*W) bf16 -- row p*oc+co is sub-pixel parity p=rd*4+rh*2+rw
    acc = jnp.dot(w_ref[0], x0_ref[...], preferred_element_type=jnp.float32)
    acc = acc + jnp.dot(w_ref[1], x1_ref[...], preferred_element_type=jnp.float32)
    o_ref[...] = (acc + b_ref[...]).astype(o_ref.dtype)


def conv_transpose_s2_pallas(x_ncdhw, w2, bias):
    """x:(B,cin,D,H,W);  w2:(2, 8*oc, 4*cin) bf16;  bias:(8*oc,1) f32.
    Returns y:(B, D, 8*oc, H*W) bf16, row p*oc+co = up[co, 2d+rd, 2h+rh, 2w+rw]."""
    B, cin, D, H, W = x_ncdhw.shape
    noc8 = w2.shape[1]
    x = x_ncdhw.astype(jnp.bfloat16)
    xp = jnp.pad(x, ((0, 0), (0, 0), (0, 1), (0, 1), (0, 1)))   # end-pad (+1)
    taps = [xp[:, :, :, ah:ah + H, aw:aw + W] for ah in (0, 1) for aw in (0, 1)]
    x4 = jnp.stack(taps, axis=1)                                # (B,4,cin,D+1,H,W)
    x4 = x4.transpose(0, 3, 1, 2, 4, 5).reshape(B, D + 1, 4 * cin, H * W)

    return pl.pallas_call(
        _up_kernel,
        out_shape=jax.ShapeDtypeStruct((B, D, noc8, H * W), jnp.bfloat16),
        grid=(B, D),
        in_specs=[_dshift_spec(0, 4 * cin, H * W),
                  _dshift_spec(1, 4 * cin, H * W),
                  pl.BlockSpec((2, noc8, 4 * cin), lambda b, d: (0, 0, 0)),
                  pl.BlockSpec((noc8, 1), lambda b, d: (0, 0))],
        out_specs=pl.BlockSpec((None, None, noc8, H * W), lambda b, d: (b, d, 0, 0)),
        compiler_params=pltpu.CompilerParams(
            dimension_semantics=("parallel", "parallel"),
            vmem_limit_bytes=_VMEM_LIMIT),
    )(x4, x4, w2, bias)


# ---------------------------------------------------------------------------
# Kernel 2: first 3x3x3 conv of ResConvBlock (+ReLU) with the 1x1x1 skip
# projection fused in (it reuses the centre tap of the same im2col block).
# ---------------------------------------------------------------------------
def _c1_kernel(x0_ref, x1_ref, x2_ref, w_ref, b_ref, wsk_ref, bsk_ref,
               h_ref, r_ref, *, c_cat):
    # x*_ref : (9*c_cat, M) bf16 -- (kh,kw)-im2col'd cat at D rows d, d+1, d+2
    # w_ref  : (3, oc, 9*c_cat) bf16   b_ref/bsk_ref: (oc,1) f32
    # wsk_ref: (oc, c_cat) bf16
    acc = jnp.dot(w_ref[0], x0_ref[...], preferred_element_type=jnp.float32)
    acc = acc + jnp.dot(w_ref[1], x1_ref[...], preferred_element_type=jnp.float32)
    acc = acc + jnp.dot(w_ref[2], x2_ref[...], preferred_element_type=jnp.float32)
    h_ref[...] = jnp.maximum(acc + b_ref[...], 0.0).astype(h_ref.dtype)
    # 1x1x1 residual projection: centre tap (kd=1, kh=1, kw=1) == cat[:, d, h, w]
    centre = x1_ref[pl.ds(4 * c_cat, c_cat), :]
    r_ref[...] = (jnp.dot(wsk_ref[...], centre, preferred_element_type=jnp.float32)
                  + bsk_ref[...]).astype(r_ref.dtype)


def conv3_c1_pallas(xcol, w_t, bias, wsk, bsk):
    """xcol:(B, Dv+2, 9*C, M) bf16. Returns (h bf16, res f32), each (B, Dv, oc, M)."""
    B, dp2, k9, M = xcol.shape
    assert k9 % 9 == 0
    dv, c_cat = dp2 - 2, k9 // 9
    oc = w_t.shape[1]
    h, res = pl.pallas_call(
        functools.partial(_c1_kernel, c_cat=c_cat),
        out_shape=(jax.ShapeDtypeStruct((B, dv, oc, M), jnp.bfloat16),
                   jax.ShapeDtypeStruct((B, dv, oc, M), jnp.float32)),
        grid=(B, dv),
        in_specs=[_dshift_spec(0, k9, M), _dshift_spec(1, k9, M), _dshift_spec(2, k9, M),
                  pl.BlockSpec((3, oc, k9), lambda b, d: (0, 0, 0)),
                  pl.BlockSpec((oc, 1), lambda b, d: (0, 0)),
                  pl.BlockSpec((oc, c_cat), lambda b, d: (0, 0)),
                  pl.BlockSpec((oc, 1), lambda b, d: (0, 0))],
        out_specs=(pl.BlockSpec((None, None, oc, M), lambda b, d: (b, d, 0, 0)),
                   pl.BlockSpec((None, None, oc, M), lambda b, d: (b, d, 0, 0))),
        compiler_params=pltpu.CompilerParams(
            dimension_semantics=("parallel", "parallel"),
            vmem_limit_bytes=_VMEM_LIMIT),
    )(xcol, xcol, xcol, w_t, bias, wsk, bsk)
    return h, res


# ---------------------------------------------------------------------------
# Kernel 3: second 3x3x3 conv with fused (bias + residual + ReLU) epilogue.
# ---------------------------------------------------------------------------
def _c2_kernel(x0_ref, x1_ref, x2_ref, w_ref, b_ref, res_ref, o_ref):
    acc = jnp.dot(w_ref[0], x0_ref[...], preferred_element_type=jnp.float32)
    acc = acc + jnp.dot(w_ref[1], x1_ref[...], preferred_element_type=jnp.float32)
    acc = acc + jnp.dot(w_ref[2], x2_ref[...], preferred_element_type=jnp.float32)
    o_ref[...] = jnp.maximum(acc + b_ref[...] + res_ref[...], 0.0).astype(o_ref.dtype)


def conv3_c2_pallas(xcol, w_t, bias, res):
    """xcol:(B, Dv+2, 9*C, M) bf16;  res:(B, Dv, oc, M) f32.  -> (B, Dv, oc, M) f32."""
    B, dp2, k9, M = xcol.shape
    assert k9 % 9 == 0
    dv = dp2 - 2
    oc = w_t.shape[1]
    return pl.pallas_call(
        _c2_kernel,
        out_shape=jax.ShapeDtypeStruct((B, dv, oc, M), jnp.float32),
        grid=(B, dv),
        in_specs=[_dshift_spec(0, k9, M), _dshift_spec(1, k9, M), _dshift_spec(2, k9, M),
                  pl.BlockSpec((3, oc, k9), lambda b, d: (0, 0, 0)),
                  pl.BlockSpec((oc, 1), lambda b, d: (0, 0)),
                  pl.BlockSpec((None, None, oc, M), lambda b, d: (b, d, 0, 0))],
        out_specs=pl.BlockSpec((None, None, oc, M), lambda b, d: (b, d, 0, 0)),
        compiler_params=pltpu.CompilerParams(
            dimension_semantics=("parallel", "parallel"),
            vmem_limit_bytes=_VMEM_LIMIT),
    )(xcol, xcol, xcol, w_t, bias, res)


# ---------------------------------------------------------------------------
# Host-side im2col (XLA reformat: pads D/H/W by 1 and folds (kh,kw) into K).
# ---------------------------------------------------------------------------
def _im2col_hw_cf(x_cf):
    """x_cf:(B, C, Dv, Hv, Wv) channel-first -> (B, Dv+2, 9*C, Hv*Wv) bf16."""
    B, C, Dv, Hv, Wv = x_cf.shape
    xp = jnp.pad(x_cf, ((0, 0), (0, 0), (1, 1), (1, 1), (1, 1)))
    taps = [xp[:, :, :, kh:kh + Hv, kw:kw + Wv] for kh in range(3) for kw in range(3)]
    xt = jnp.stack(taps, axis=1)                      # (B, 9, C, Dv+2, Hv, Wv)
    return xt.transpose(0, 3, 1, 2, 4, 5).reshape(B, Dv + 2, 9 * C, Hv * Wv)


# ---------------------------------------------------------------------------
# Parameter packing (once at init: bf16 cast + transposed-GEMM layouts).
# ---------------------------------------------------------------------------
def prep_conv3(w, bias):
    # w:(3,3,3,Cin,Cout) == torch Conv3d.weight(Cout,Cin,3,3,3).transpose(2,3,4,1,0)
    _, _, _, cin, cout = w.shape
    wt = jnp.transpose(w, (0, 4, 1, 2, 3)).reshape(3, cout, 9 * cin)
    return {"w": wt.astype(jnp.bfloat16),
            "b": bias.reshape(cout, 1).astype(jnp.float32)}


def prep_conv1x1(w, bias):
    cin, cout = w.shape
    return {"w": jnp.transpose(w).astype(jnp.bfloat16),            # (cout, cin)
            "b": bias.reshape(cout, 1).astype(jnp.float32)}


def prep_conv_transpose_s2(w_t, bias):
    """Pack ConvTranspose3d(k=3,s=2,p=1,op=1) for the sub-pixel decomposition.
    w_t:(3,3,3,Cin,Cout) is the 'direct' transposed-conv kernel
    (out[2i-1+k] += x[i]*w_t[k] per dim), i.e. torch
    ConvTranspose3d.weight(Cin,Cout,3,3,3).transpose(2,3,4,0,1).
    Returns w2:(2, 8*Cout, 4*Cin): w2[ad, p*Cout+co, (ah*2+aw)*Cin+ci] maps
    end-padded x[ci, d+ad, h+ah, w+aw] to parity p = rd*4+rh*2+rw of output
    (2d+rd, 2h+rh, 2w+rw)."""
    cin, cout = w_t.shape[3], w_t.shape[4]
    w_np = np.asarray(w_t, np.float32)
    w2 = np.zeros((2, 8 * cout, 4 * cin), np.float32)
    for ad in range(2):
        for ah in range(2):
            for aw in range(2):
                a2 = ah * 2 + aw
                for rd in range(2):
                    kd = rd - 2 * ad + 1
                    if not 0 <= kd <= 2:
                        continue
                    for rh in range(2):
                        kh = rh - 2 * ah + 1
                        if not 0 <= kh <= 2:
                            continue
                        for rw in range(2):
                            kw = rw - 2 * aw + 1
                            if not 0 <= kw <= 2:
                                continue
                            p = (rd * 2 + rh) * 2 + rw
                            w2[ad, p * cout:(p + 1) * cout,
                               a2 * cin:(a2 + 1) * cin] = w_np[kd, kh, kw].T
    b2 = np.tile(np.asarray(bias, np.float32), 8).reshape(8 * cout, 1)
    return {"w": jnp.asarray(w2, jnp.bfloat16), "b": jnp.asarray(b2, jnp.float32)}


# ---------------------------------------------------------------------------
# FocalConvUpBlock forward:  up(x) -> cat(up, skip) -> ResConvBlock
# ---------------------------------------------------------------------------
def focal_conv_up_block_forward(params, x_ncdhw, skip_ncdhw):
    B, cin, D, H, W = x_ncdhw.shape
    oc = params["skip"]["w"].shape[0]
    D2, H2, W2 = 2 * D, 2 * H, 2 * W

    # ---- up: ConvTranspose3d(k3,s2,p1,op1) as a sub-pixel transposed GEMM.
    y = conv_transpose_s2_pallas(x_ncdhw, params["up"]["w"], params["up"]["b"])
    # pixel shuffle back to channel-first spatial form; this reformat fuses
    # into the pad/concat/im2col producer of the next conv's input.
    y = y.reshape(B, D, 2, 2, 2, oc, H, W)
    up_cf = y.transpose(0, 5, 1, 2, 6, 3, 7, 4).reshape(B, oc, D2, H2, W2)

    # ---- concat along channels (== torch.cat(dim=1) in NCDHW)
    cat_cf = jnp.concatenate([up_cf, skip_ncdhw.astype(jnp.bfloat16)], axis=1)

    # ---- ResConvBlock
    # TODO(synk): ResConvBlock source not provided; assumed conv3-relu-conv3 +
    # 1x1 residual projection, final ReLU (dropout is identity in eval).
    xcol1 = _im2col_hw_cf(cat_cf)                         # (B, D2+2, 9*2oc, H2*W2)
    h, res = conv3_c1_pallas(xcol1, params["c1"]["w"], params["c1"]["b"],
                             params["skip"]["w"], params["skip"]["b"])
    h_cf = h.reshape(B, D2, oc, H2, W2).transpose(0, 2, 1, 3, 4)
    xcol2 = _im2col_hw_cf(h_cf)                           # (B, D2+2, 9*oc, H2*W2)
    out = conv3_c2_pallas(xcol2, params["c2"]["w"], params["c2"]["b"], res)
    out = out.reshape(B, D2, oc, H2, W2).transpose(0, 2, 1, 3, 4)   # -> NCDHW f32
    return out


# ---------------------------------------------------------------------------
# Pure-JAX f32 reference (numerical cross-check of the Pallas path).
# ---------------------------------------------------------------------------
def _ref_conv(x, w, bias, pad):
    return jax.lax.conv_general_dilated(
        x, w, window_strides=(1, 1, 1), padding=[(pad, pad)] * 3,
        dimension_numbers=("NDHWC", "DHWIO", "NDHWC")) + bias


def _ref_conv_transpose_s2(x, w_t, bias):
    w_f = w_t[::-1, ::-1, ::-1]          # XLA conv is a correlation -> flip
    return jax.lax.conv_general_dilated(
        x, w_f, window_strides=(1, 1, 1), padding=[(1, 2)] * 3,
        lhs_dilation=(2, 2, 2),
        dimension_numbers=("NDHWC", "DHWIO", "NDHWC")) + bias


def reference_forward(raw, x_ncdhw, skip_ncdhw):
    r = lambda a: a.astype(jnp.bfloat16).astype(jnp.float32)
    x = r(jnp.transpose(x_ncdhw, (0, 2, 3, 4, 1)))
    skip = r(jnp.transpose(skip_ncdhw, (0, 2, 3, 4, 1)))
    up = _ref_conv_transpose_s2(x, r(raw["w_up"]), raw["b_up"])
    cat = jnp.concatenate([up, skip], axis=-1)
    res = _ref_conv(cat, r(raw["w_sk"])[None, None, None], raw["b_sk"], pad=0)
    h = jax.nn.relu(_ref_conv(cat, r(raw["w_c1"]), raw["b_c1"], pad=1))
    out = jax.nn.relu(_ref_conv(h, r(raw["w_c2"]), raw["b_c2"], pad=1) + res)
    return jnp.transpose(out, (0, 4, 1, 2, 3))


# ---------------------------------------------------------------------------
def make_params(key, in_ch, out_ch):
    std = 0.02
    ks = jax.random.split(key, 8)
    tn = lambda k, s: (std * jax.random.truncated_normal(k, -2.0, 2.0, s)
                       ).astype(jnp.float32)
    raw = {
        "w_up": tn(ks[0], (3, 3, 3, in_ch, out_ch)), "b_up": tn(ks[1], (out_ch,)),
        "w_c1": tn(ks[2], (3, 3, 3, 2 * out_ch, out_ch)), "b_c1": tn(ks[3], (out_ch,)),
        "w_c2": tn(ks[4], (3, 3, 3, out_ch, out_ch)), "b_c2": tn(ks[5], (out_ch,)),
        "w_sk": tn(ks[6], (2 * out_ch, out_ch)), "b_sk": tn(ks[7], (out_ch,)),
    }
    params = {
        "up": prep_conv_transpose_s2(raw["w_up"], raw["b_up"]),
        "c1": prep_conv3(raw["w_c1"], raw["b_c1"]),
        "c2": prep_conv3(raw["w_c2"], raw["b_c2"]),
        "skip": prep_conv1x1(raw["w_sk"], raw["b_sk"]),
    }
    return params, raw


if __name__ == "__main__":
    B, in_ch, out_ch, S = 2, 32, 16, 8
    key = jax.random.PRNGKey(0)
    kp, kx, ksk = jax.random.split(key, 3)
    params, raw = make_params(kp, in_ch, out_ch)
    x = jax.random.normal(kx, (B, in_ch, S, S, S), jnp.float32)
    skip = jax.random.normal(ksk, (B, out_ch, 2 * S, 2 * S, 2 * S), jnp.float32)

    fwd = jax.jit(focal_conv_up_block_forward)
    out = fwd(params, x, skip)
    jax.block_until_ready(out)

    assert out.shape == (B, out_ch, 2 * S, 2 * S, 2 * S)
    assert bool(jnp.all(jnp.isfinite(out)))

    ref = reference_forward(raw, x, skip)
    err = float(jnp.max(jnp.abs(out - ref)))
    assert err < 5e-2, f"mismatch vs reference: max abs err {err}"
    print("KERNEL_OK")
</pallas_src>

<mosaic_0001>
module attributes {stable_mosaic.version = 11 : i64} {
  func.func @_up_kernel(%arg0: i32, %arg1: i32, %arg2: memref<1x1x128x64xbf16, #tpu.memory_space<vmem>>, %arg3: memref<1x1x128x64xbf16, #tpu.memory_space<vmem>>, %arg4: memref<2x128x128xbf16, #tpu.memory_space<vmem>>, %arg5: memref<128x1xf32, #tpu.memory_space<vmem>>, %arg6: memref<1x1x128x64xbf16, #tpu.memory_space<vmem>>) attributes {dimension_semantics = [#tpu.dimension_semantics<parallel>, #tpu.dimension_semantics<parallel>], iteration_bounds = array<i64: 2, 8>, scalar_prefetch = 0 : i64, scratch_operands = 0 : i64, tpu.core_type = #tpu.core_type<tc>, window_params = [{transform_indices = @transform_0, window_bounds = array<i64: 1, 1, 128, 64>}, {transform_indices = @transform_1, window_bounds = array<i64: 1, 1, 128, 64>}, {pipeline_mode = #tpu.pipeline_mode<synchronous>, transform_indices = @transform_2, window_bounds = array<i64: 2, 128, 128>}, {pipeline_mode = #tpu.pipeline_mode<synchronous>, transform_indices = @transform_3, window_bounds = array<i64: 128, 1>}, {transform_indices = @transform_4, window_bounds = array<i64: 1, 1, 128, 64>}]} {
    %c0 = arith.constant 0 : index
    %c0_0 = arith.constant 0 : index
    %c0_1 = arith.constant 0 : index
    %0 = vector.load %arg4[%c0, %c0_0, %c0_1] : memref<2x128x128xbf16, #tpu.memory_space<vmem>>, vector<1x128x128xbf16>
    %1 = vector.shape_cast %0 : vector<1x128x128xbf16> to vector<128x128xbf16>
    %c0_2 = arith.constant 0 : index
    %c0_3 = arith.constant 0 : index
    %c0_4 = arith.constant 0 : index
    %c0_5 = arith.constant 0 : index
    %2 = vector.load %arg2[%c0_2, %c0_3, %c0_4, %c0_5] : memref<1x1x128x64xbf16, #tpu.memory_space<vmem>>, vector<1x1x128x64xbf16>
    %3 = vector.shape_cast %2 : vector<1x1x128x64xbf16> to vector<128x64xbf16>
    %cst = arith.constant dense<0.000000e+00> : vector<128x64xf32>
    %4 = tpu.matmul %1, %3, %cst {dimension_numbers = #tpu.dot_dimension_numbers<[1], [0], [0], [1], [0, 0, 1, 1], [], []>} : vector<128x128xbf16>, vector<128x64xbf16>, vector<128x64xf32> -> vector<128x64xf32>
    %c1 = arith.constant 1 : index
    %c0_6 = arith.constant 0 : index
    %c0_7 = arith.constant 0 : index
    %5 = vector.load %arg4[%c1, %c0_6, %c0_7] : memref<2x128x128xbf16, #tpu.memory_space<vmem>>, vector<1x128x128xbf16>
    %6 = vector.shape_cast %5 : vector<1x128x128xbf16> to vector<128x128xbf16>
    %c0_8 = arith.constant 0 : index
    %c0_9 = arith.constant 0 : index
    %c0_10 = arith.constant 0 : index
    %c0_11 = arith.constant 0 : index
    %7 = vector.load %arg3[%c0_8, %c0_9, %c0_10, %c0_11] : memref<1x1x128x64xbf16, #tpu.memory_space<vmem>>, vector<1x1x128x64xbf16>
    %8 = vector.shape_cast %7 : vector<1x1x128x64xbf16> to vector<128x64xbf16>
    %cst_12 = arith.constant dense<0.000000e+00> : vector<128x64xf32>
    %9 = tpu.matmul %6, %8, %cst_12 {dimension_numbers = #tpu.dot_dimension_numbers<[1], [0], [0], [1], [0, 0, 1, 1], [], []>} : vector<128x128xbf16>, vector<128x64xbf16>, vector<128x64xf32> -> vector<128x64xf32>
    %10 = arith.addf %4, %9 : vector<128x64xf32>
    %c0_13 = arith.constant 0 : index
    %c0_14 = arith.constant 0 : index
    %11 = vector.load %arg5[%c0_13, %c0_14] : memref<128x1xf32, #tpu.memory_space<vmem>>, vector<128x1xf32>
    %12 = vector.broadcast %11 : vector<128x1xf32> to vector<128x64xf32>
    %13 = arith.addf %10, %12 : vector<128x64xf32>
    %14 = arith.truncf %13 : vector<128x64xf32> to vector<128x64xbf16>
    %c0_15 = arith.constant 0 : index
    %c0_16 = arith.constant 0 : index
    %c0_17 = arith.constant 0 : index
    %c0_18 = arith.constant 0 : index
    %15 = vector.load %arg6[%c0_15, %c0_16, %c0_17, %c0_18] : memref<1x1x128x64xbf16, #tpu.memory_space<vmem>>, vector<1x1x128x64xbf16>
    %16 = vector.shape_cast %15 : vector<1x1x128x64xbf16> to vector<128x64xbf16>
    %17 = vector.shape_cast %14 : vector<128x64xbf16> to vector<1x1x128x64xbf16>
    tpu.vector_store %arg6[%c0_15, %c0_16, %c0_17, %c0_18], %17 {strides = array<i32>} : memref<1x1x128x64xbf16, #tpu.memory_space<vmem>>, vector<1x1x128x64xbf16>,
    return
  }
  func.func @transform_0(%arg0: i32, %arg1: i32) -> (i32, i32, i32, i32) {
    %c0_i32 = arith.constant 0 : i32
    %0 = arith.addi %arg1, %c0_i32 : i32
    %c0_i32_0 = arith.constant 0 : i32
    %c0_i32_1 = arith.constant 0 : i32
    %c0_i32_2 = arith.constant 0 : i32
    return %arg0, %0, %c0_i32_0, %c0_i32_1 : i32, i32, i32, i32
  }
  func.func @transform_1(%arg0: i32, %arg1: i32) -> (i32, i32, i32, i32) {
    %c1_i32 = arith.constant 1 : i32
    %0 = arith.addi %arg1, %c1_i32 : i32
    %c0_i32 = arith.constant 0 : i32
    %c0_i32_0 = arith.constant 0 : i32
    %c0_i32_1 = arith.constant 0 : i32
    return %arg0, %0, %c0_i32, %c0_i32_0 : i32, i32, i32, i32
  }
  func.func @transform_2(%arg0: i32, %arg1: i32) -> (i32, i32, i32) {
    %c0_i32 = arith.constant 0 : i32
    %c0_i32_0 = arith.constant 0 : i32
    %c0_i32_1 = arith.constant 0 : i32
    %c0_i32_2 = arith.constant 0 : i32
    return %c0_i32, %c0_i32_0, %c0_i32_1 : i32, i32, i32
  }
  func.func @transform_3(%arg0: i32, %arg1: i32) -> (i32, i32) {
    %c0_i32 = arith.constant 0 : i32
    %c0_i32_0 = arith.constant 0 : i32
    %c0_i32_1 = arith.constant 0 : i32
    return %c0_i32, %c0_i32_0 : i32, i32
  }
  func.func @transform_4(%arg0: i32, %arg1: i32) -> (i32, i32, i32, i32) {
    %c0_i32 = arith.constant 0 : i32
    %c0_i32_0 = arith.constant 0 : i32
    %c0_i32_1 = arith.constant 0 : i32
    return %arg0, %arg1, %c0_i32, %c0_i32_0 : i32, i32, i32, i32
  }
}

module attributes {stable_mosaic.version = 11 : i64} {
  func.func @_c1_kernel(%arg0: i32, %arg1: i32, %arg2: memref<1x1x288x256xbf16, #tpu.memory_space<vmem>>, %arg3: memref<1x1x288x256xbf16, #tpu.memory_space<vmem>>, %arg4: memref<1x1x288x256xbf16, #tpu.memory_space<vmem>>, %arg5: memref<3x16x288xbf16, #tpu.memory_space<vmem>>, %arg6: memref<16x1xf32, #tpu.memory_space<vmem>>, %arg7: memref<16x32xbf16, #tpu.memory_space<vmem>>, %arg8: memref<16x1xf32, #tpu.memory_space<vmem>>, %arg9: memref<1x1x16x256xbf16, #tpu.memory_space<vmem>>, %arg10: memref<1x1x16x256xf32, #tpu.memory_space<vmem>>) attributes {dimension_semantics = [#tpu.dimension_semantics<parallel>, #tpu.dimension_semantics<parallel>], iteration_bounds = array<i64: 2, 16>, scalar_prefetch = 0 : i64, scratch_operands = 0 : i64, tpu.core_type = #tpu.core_type<tc>, window_params = [{transform_indices = @transform_0, window_bounds = array<i64: 1, 1, 288, 256>}, {transform_indices = @transform_1, window_bounds = array<i64: 1, 1, 288, 256>}, {transform_indices = @transform_2, window_bounds = array<i64: 1, 1, 288, 256>}, {pipeline_mode = #tpu.pipeline_mode<synchronous>, transform_indices = @transform_3, window_bounds = array<i64: 3, 16, 288>}, {pipeline_mode = #tpu.pipeline_mode<synchronous>, transform_indices = @transform_4, window_bounds = array<i64: 16, 1>}, {pipeline_mode = #tpu.pipeline_mode<synchronous>, transform_indices = @transform_5, window_bounds = array<i64: 16, 32>}, {pipeline_mode = #tpu.pipeline_mode<synchronous>, transform_indices = @transform_6, window_bounds = array<i64: 16, 1>}, {transform_indices = @transform_7, window_bounds = array<i64: 1, 1, 16, 256>}, {transform_indices = @transform_8, window_bounds = array<i64: 1, 1, 16, 256>}]} {
    %c0 = arith.constant 0 : index
    %c0_0 = arith.constant 0 : index
    %c0_1 = arith.constant 0 : index
    %0 = vector.load %arg5[%c0, %c0_0, %c0_1] : memref<3x16x288xbf16, #tpu.memory_space<vmem>>, vector<1x16x288xbf16>
    %1 = vector.shape_cast %0 : vector<1x16x288xbf16> to vector<16x288xbf16>
    %c0_2 = arith.constant 0 : index
    %c0_3 = arith.constant 0 : index
    %c0_4 = arith.constant 0 : index
    %c0_5 = arith.constant 0 : index
    %2 = vector.load %arg2[%c0_2, %c0_3, %c0_4, %c0_5] : memref<1x1x288x256xbf16, #tpu.memory_space<vmem>>, vector<1x1x288x256xbf16>
    %3 = vector.shape_cast %2 : vector<1x1x288x256xbf16> to vector<288x256xbf16>
    %cst = arith.constant dense<0.000000e+00> : vector<16x256xf32>
    %4 = tpu.matmul %1, %3, %cst {dimension_numbers = #tpu.dot_dimension_numbers<[1], [0], [0], [1], [0, 0, 1, 1], [], []>} : vector<16x288xbf16>, vector<288x256xbf16>, vector<16x256xf32> -> vector<16x256xf32>
    %c1 = arith.constant 1 : index
    %c0_6 = arith.constant 0 : index
    %c0_7 = arith.constant 0 : index
    %5 = vector.load %arg5[%c1, %c0_6, %c0_7] : memref<3x16x288xbf16, #tpu.memory_space<vmem>>, vector<1x16x288xbf16>
    %6 = vector.shape_cast %5 : vector<1x16x288xbf16> to vector<16x288xbf16>
    %c0_8 = arith.constant 0 : index
    %c0_9 = arith.constant 0 : index
    %c0_10 = arith.constant 0 : index
    %c0_11 = arith.constant 0 : index
    %7 = vector.load %arg3[%c0_8, %c0_9, %c0_10, %c0_11] : memref<1x1x288x256xbf16, #tpu.memory_space<vmem>>, vector<1x1x288x256xbf16>
    %8 = vector.shape_cast %7 : vector<1x1x288x256xbf16> to vector<288x256xbf16>
    %cst_12 = arith.constant dense<0.000000e+00> : vector<16x256xf32>
    %9 = tpu.matmul %6, %8, %cst_12 {dimension_numbers = #tpu.dot_dimension_numbers<[1], [0], [0], [1], [0, 0, 1, 1], [], []>} : vector<16x288xbf16>, vector<288x256xbf16>, vector<16x256xf32> -> vector<16x256xf32>
    %10 = arith.addf %4, %9 : vector<16x256xf32>
    %c2 = arith.constant 2 : index
    %c0_13 = arith.constant 0 : index
    %c0_14 = arith.constant 0 : index
    %11 = vector.load %arg5[%c2, %c0_13, %c0_14] : memref<3x16x288xbf16, #tpu.memory_space<vmem>>, vector<1x16x288xbf16>
    %12 = vector.shape_cast %11 : vector<1x16x288xbf16> to vector<16x288xbf16>
    %c0_15 = arith.constant 0 : index
    %c0_16 = arith.constant 0 : index
    %c0_17 = arith.constant 0 : index
    %c0_18 = arith.constant 0 : index
    %13 = vector.load %arg4[%c0_15, %c0_16, %c0_17, %c0_18] : memref<1x1x288x256xbf16, #tpu.memory_space<vmem>>, vector<1x1x288x256xbf16>
    %14 = vector.shape_cast %13 : vector<1x1x288x256xbf16> to vector<288x256xbf16>
    %cst_19 = arith.constant dense<0.000000e+00> : vector<16x256xf32>
    %15 = tpu.matmul %12, %14, %cst_19 {dimension_numbers = #tpu.dot_dimension_numbers<[1], [0], [0], [1], [0, 0, 1, 1], [], []>} : vector<16x288xbf16>, vector<288x256xbf16>, vector<16x256xf32> -> vector<16x256xf32>
    %16 = arith.addf %10, %15 : vector<16x256xf32>
    %c0_20 = arith.constant 0 : index
    %c0_21 = arith.constant 0 : index
    %17 = vector.load %arg6[%c0_20, %c0_21] : memref<16x1xf32, #tpu.memory_space<vmem>>, vector<16x1xf32>
    %18 = vector.broadcast %17 : vector<16x1xf32> to vector<16x256xf32>
    %19 = arith.addf %16, %18 : vector<16x256xf32>
    %cst_22 = arith.constant 0.000000e+00 : f32
    %20 = vector.broadcast %cst_22 : f32 to vector<16x256xf32>
    %21 = arith.maximumf %19, %20 : vector<16x256xf32>
    %22 = arith.truncf %21 : vector<16x256xf32> to vector<16x256xbf16>
    %c0_23 = arith.constant 0 : index
    %c0_24 = arith.constant 0 : index
    %c0_25 = arith.constant 0 : index
    %c0_26 = arith.constant 0 : index
    %23 = vector.load %arg9[%c0_23, %c0_24, %c0_25, %c0_26] : memref<1x1x16x256xbf16, #tpu.memory_space<vmem>>, vector<1x1x16x256xbf16>
    %24 = vector.shape_cast %23 : vector<1x1x16x256xbf16> to vector<16x256xbf16>
    %25 = vector.shape_cast %22 : vector<16x256xbf16> to vector<1x1x16x256xbf16>
    tpu.vector_store %arg9[%c0_23, %c0_24, %c0_25, %c0_26], %25 {strides = array<i32>} : memref<1x1x16x256xbf16, #tpu.memory_space<vmem>>, vector<1x1x16x256xbf16>,
    %c0_27 = arith.constant 0 : index
    %c0_28 = arith.constant 0 : index
    %c128 = arith.constant 128 : index
    %c0_29 = arith.constant 0 : index
    %26 = vector.load %arg3[%c0_27, %c0_28, %c128, %c0_29] : memref<1x1x288x256xbf16, #tpu.memory_space<vmem>>, vector<1x1x32x256xbf16>
    %27 = vector.shape_cast %26 : vector<1x1x32x256xbf16> to vector<32x256xbf16>
    %c0_30 = arith.constant 0 : index
    %c0_31 = arith.constant 0 : index
    %28 = vector.load %arg7[%c0_30, %c0_31] : memref<16x32xbf16, #tpu.memory_space<vmem>>, vector<16x32xbf16>
    %cst_32 = arith.constant dense<0.000000e+00> : vector<16x256xf32>
    %29 = tpu.matmul %28, %27, %cst_32 {dimension_numbers = #tpu.dot_dimension_numbers<[1], [0], [0], [1], [0, 0, 1, 1], [], []>} : vector<16x32xbf16>, vector<32x256xbf16>, vector<16x256xf32> -> vector<16x256xf32>
    %c0_33 = arith.constant 0 : index
    %c0_34 = arith.constant 0 : index
    %30 = vector.load %arg8[%c0_33, %c0_34] : memref<16x1xf32, #tpu.memory_space<vmem>>, vector<16x1xf32>
    %31 = vector.broadcast %30 : vector<16x1xf32> to vector<16x256xf32>
    %32 = arith.addf %29, %31 : vector<16x256xf32>
    %c0_35 = arith.constant 0 : index
    %c0_36 = arith.constant 0 : index
    %c0_37 = arith.constant 0 : index
    %c0_38 = arith.constant 0 : index
    %33 = vector.load %arg10[%c0_35, %c0_36, %c0_37, %c0_38] : memref<1x1x16x256xf32, #tpu.memory_space<vmem>>, vector<1x1x16x256xf32>
    %34 = vector.shape_cast %33 : vector<1x1x16x256xf32> to vector<16x256xf32>
    %35 = vector.shape_cast %32 : vector<16x256xf32> to vector<1x1x16x256xf32>
    tpu.vector_store %arg10[%c0_35, %c0_36, %c0_37, %c0_38], %35 {strides = array<i32>} : memref<1x1x16x256xf32, #tpu.memory_space<vmem>>, vector<1x1x16x256xf32>,
    return
  }
  func.func @transform_0(%arg0: i32, %arg1: i32) -> (i32, i32, i32, i32) {
    %c0_i32 = arith.constant 0 : i32
    %0 = arith.addi %arg1, %c0_i32 : i32
    %c0_i32_0 = arith.constant 0 : i32
    %c0_i32_1 = arith.constant 0 : i32
    %c0_i32_2 = arith.constant 0 : i32
    return %arg0, %0, %c0_i32_0, %c0_i32_1 : i32, i32, i32, i32
  }
  func.func @transform_1(%arg0: i32, %arg1: i32) -> (i32, i32, i32, i32) {
    %c1_i32 = arith.constant 1 : i32
    %0 = arith.addi %arg1, %c1_i32 : i32
    %c0_i32 = arith.constant 0 : i32
    %c0_i32_0 = arith.constant 0 : i32
    %c0_i32_1 = arith.constant 0 : i32
    return %arg0, %0, %c0_i32, %c0_i32_0 : i32, i32, i32, i32
  }
  func.func @transform_2(%arg0: i32, %arg1: i32) -> (i32, i32, i32, i32) {
    %c2_i32 = arith.constant 2 : i32
    %0 = arith.addi %arg1, %c2_i32 : i32
    %c0_i32 = arith.constant 0 : i32
    %c0_i32_0 = arith.constant 0 : i32
    %c0_i32_1 = arith.constant 0 : i32
    return %arg0, %0, %c0_i32, %c0_i32_0 : i32, i32, i32, i32
  }
  func.func @transform_3(%arg0: i32, %arg1: i32) -> (i32, i32, i32) {
    %c0_i32 = arith.constant 0 : i32
    %c0_i32_0 = arith.constant 0 : i32
    %c0_i32_1 = arith.constant 0 : i32
    %c0_i32_2 = arith.constant 0 : i32
    return %c0_i32, %c0_i32_0, %c0_i32_1 : i32, i32, i32
  }
  func.func @transform_4(%arg0: i32, %arg1: i32) -> (i32, i32) {
    %c0_i32 = arith.constant 0 : i32
    %c0_i32_0 = arith.constant 0 : i32
    %c0_i32_1 = arith.constant 0 : i32
    return %c0_i32, %c0_i32_0 : i32, i32
  }
  func.func @transform_5(%arg0: i32, %arg1: i32) -> (i32, i32) {
    %c0_i32 = arith.constant 0 : i32
    %c0_i32_0 = arith.constant 0 : i32
    %c0_i32_1 = arith.constant 0 : i32
    return %c0_i32, %c0_i32_0 : i32, i32
  }
  func.func @transform_6(%arg0: i32, %arg1: i32) -> (i32, i32) {
    %c0_i32 = arith.constant 0 : i32
    %c0_i32_0 = arith.constant 0 : i32
    %c0_i32_1 = arith.constant 0 : i32
    return %c0_i32, %c0_i32_0 : i32, i32
  }
  func.func @transform_7(%arg0: i32, %arg1: i32) -> (i32, i32, i32, i32) {
    %c0_i32 = arith.constant 0 : i32
    %c0_i32_0 = arith.constant 0 : i32
    %c0_i32_1 = arith.constant 0 : i32
    return %arg0, %arg1, %c0_i32, %c0_i32_0 : i32, i32, i32, i32
  }
  func.func @transform_8(%arg0: i32, %arg1: i32) -> (i32, i32, i32, i32) {
    %c0_i32 = arith.constant 0 : i32
    %c0_i32_0 = arith.constant 0 : i32
    %c0_i32_1 = arith.constant 0 : i32
    return %arg0, %arg1, %c0_i32, %c0_i32_0 : i32, i32, i32, i32
  }
}

module attributes {stable_mosaic.version = 11 : i64} {
  func.func @_c2_kernel(%arg0: i32, %arg1: i32, %arg2: memref<1x1x144x256xbf16, #tpu.memory_space<vmem>>, %arg3: memref<1x1x144x256xbf16, #tpu.memory_space<vmem>>, %arg4: memref<1x1x144x256xbf16, #tpu.memory_space<vmem>>, %arg5: memref<3x16x144xbf16, #tpu.memory_space<vmem>>, %arg6: memref<16x1xf32, #tpu.memory_space<vmem>>, %arg7: memref<1x1x16x256xf32, #tpu.memory_space<vmem>>, %arg8: memref<1x1x16x256xf32, #tpu.memory_space<vmem>>) attributes {dimension_semantics = [#tpu.dimension_semantics<parallel>, #tpu.dimension_semantics<parallel>], iteration_bounds = array<i64: 2, 16>, scalar_prefetch = 0 : i64, scratch_operands = 0 : i64, tpu.core_type = #tpu.core_type<tc>, window_params = [{transform_indices = @transform_0, window_bounds = array<i64: 1, 1, 144, 256>}, {transform_indices = @transform_1, window_bounds = array<i64: 1, 1, 144, 256>}, {transform_indices = @transform_2, window_bounds = array<i64: 1, 1, 144, 256>}, {pipeline_mode = #tpu.pipeline_mode<synchronous>, transform_indices = @transform_3, window_bounds = array<i64: 3, 16, 144>}, {pipeline_mode = #tpu.pipeline_mode<synchronous>, transform_indices = @transform_4, window_bounds = array<i64: 16, 1>}, {transform_indices = @transform_5, window_bounds = array<i64: 1, 1, 16, 256>}, {transform_indices = @transform_6, window_bounds = array<i64: 1, 1, 16, 256>}]} {
    %c0 = arith.constant 0 : index
    %c0_0 = arith.constant 0 : index
    %c0_1 = arith.constant 0 : index
    %0 = vector.load %arg5[%c0, %c0_0, %c0_1] : memref<3x16x144xbf16, #tpu.memory_space<vmem>>, vector<1x16x144xbf16>
    %1 = vector.shape_cast %0 : vector<1x16x144xbf16> to vector<16x144xbf16>
    %c0_2 = arith.constant 0 : index
    %c0_3 = arith.constant 0 : index
    %c0_4 = arith.constant 0 : index
    %c0_5 = arith.constant 0 : index
    %2 = vector.load %arg2[%c0_2, %c0_3, %c0_4, %c0_5] : memref<1x1x144x256xbf16, #tpu.memory_space<vmem>>, vector<1x1x144x256xbf16>
    %3 = vector.shape_cast %2 : vector<1x1x144x256xbf16> to vector<144x256xbf16>
    %cst = arith.constant dense<0.000000e+00> : vector<16x256xf32>
    %4 = tpu.matmul %1, %3, %cst {dimension_numbers = #tpu.dot_dimension_numbers<[1], [0], [0], [1], [0, 0, 1, 1], [], []>} : vector<16x144xbf16>, vector<144x256xbf16>, vector<16x256xf32> -> vector<16x256xf32>
    %c1 = arith.constant 1 : index
    %c0_6 = arith.constant 0 : index
    %c0_7 = arith.constant 0 : index
    %5 = vector.load %arg5[%c1, %c0_6, %c0_7] : memref<3x16x144xbf16, #tpu.memory_space<vmem>>, vector<1x16x144xbf16>
    %6 = vector.shape_cast %5 : vector<1x16x144xbf16> to vector<16x144xbf16>
    %c0_8 = arith.constant 0 : index
    %c0_9 = arith.constant 0 : index
    %c0_10 = arith.constant 0 : index
    %c0_11 = arith.constant 0 : index
    %7 = vector.load %arg3[%c0_8, %c0_9, %c0_10, %c0_11] : memref<1x1x144x256xbf16, #tpu.memory_space<vmem>>, vector<1x1x144x256xbf16>
    %8 = vector.shape_cast %7 : vector<1x1x144x256xbf16> to vector<144x256xbf16>
    %cst_12 = arith.constant dense<0.000000e+00> : vector<16x256xf32>
    %9 = tpu.matmul %6, %8, %cst_12 {dimension_numbers = #tpu.dot_dimension_numbers<[1], [0], [0], [1], [0, 0, 1, 1], [], []>} : vector<16x144xbf16>, vector<144x256xbf16>, vector<16x256xf32> -> vector<16x256xf32>
    %10 = arith.addf %4, %9 : vector<16x256xf32>
    %c2 = arith.constant 2 : index
    %c0_13 = arith.constant 0 : index
    %c0_14 = arith.constant 0 : index
    %11 = vector.load %arg5[%c2, %c0_13, %c0_14] : memref<3x16x144xbf16, #tpu.memory_space<vmem>>, vector<1x16x144xbf16>
    %12 = vector.shape_cast %11 : vector<1x16x144xbf16> to vector<16x144xbf16>
    %c0_15 = arith.constant 0 : index
    %c0_16 = arith.constant 0 : index
    %c0_17 = arith.constant 0 : index
    %c0_18 = arith.constant 0 : index
    %13 = vector.load %arg4[%c0_15, %c0_16, %c0_17, %c0_18] : memref<1x1x144x256xbf16, #tpu.memory_space<vmem>>, vector<1x1x144x256xbf16>
    %14 = vector.shape_cast %13 : vector<1x1x144x256xbf16> to vector<144x256xbf16>
    %cst_19 = arith.constant dense<0.000000e+00> : vector<16x256xf32>
    %15 = tpu.matmul %12, %14, %cst_19 {dimension_numbers = #tpu.dot_dimension_numbers<[1], [0], [0], [1], [0, 0, 1, 1], [], []>} : vector<16x144xbf16>, vector<144x256xbf16>, vector<16x256xf32> -> vector<16x256xf32>
    %16 = arith.addf %10, %15 : vector<16x256xf32>
    %c0_20 = arith.constant 0 : index
    %c0_21 = arith.constant 0 : index
    %17 = vector.load %arg6[%c0_20, %c0_21] : memref<16x1xf32, #tpu.memory_space<vmem>>, vector<16x1xf32>
    %18 = vector.broadcast %17 : vector<16x1xf32> to vector<16x256xf32>
    %19 = arith.addf %16, %18 : vector<16x256xf32>
    %c0_22 = arith.constant 0 : index
    %c0_23 = arith.constant 0 : index
    %c0_24 = arith.constant 0 : index
    %c0_25 = arith.constant 0 : index
    %20 = vector.load %arg7[%c0_22, %c0_23, %c0_24, %c0_25] : memref<1x1x16x256xf32, #tpu.memory_space<vmem>>, vector<1x1x16x256xf32>
    %21 = vector.shape_cast %20 : vector<1x1x16x256xf32> to vector<16x256xf32>
    %22 = arith.addf %19, %21 : vector<16x256xf32>
    %cst_26 = arith.constant 0.000000e+00 : f32
    %23 = vector.broadcast %cst_26 : f32 to vector<16x256xf32>
    %24 = arith.maximumf %22, %23 : vector<16x256xf32>
    %c0_27 = arith.constant 0 : index
    %c0_28 = arith.constant 0 : index
    %c0_29 = arith.constant 0 : index
    %c0_30 = arith.constant 0 : index
    %25 = vector.load %arg8[%c0_27, %c0_28, %c0_29, %c0_30] : memref<1x1x16x256xf32, #tpu.memory_space<vmem>>, vector<1x1x16x256xf32>
    %26 = vector.shape_cast %25 : vector<1x1x16x256xf32> to vector<16x256xf32>
    %27 = vector.shape_cast %24 : vector<16x256xf32> to vector<1x1x16x256xf32>
    tpu.vector_store %arg8[%c0_27, %c0_28, %c0_29, %c0_30], %27 {strides = array<i32>} : memref<1x1x16x256xf32, #tpu.memory_space<vmem>>, vector<1x1x16x256xf32>,
    return
  }
  func.func @transform_0(%arg0: i32, %arg1: i32) -> (i32, i32, i32, i32) {
    %c0_i32 = arith.constant 0 : i32
    %0 = arith.addi %arg1, %c0_i32 : i32
    %c0_i32_0 = arith.constant 0 : i32
    %c0_i32_1 = arith.constant 0 : i32
    %c0_i32_2 = arith.constant 0 : i32
    return %arg0, %0, %c0_i32_0, %c0_i32_1 : i32, i32, i32, i32
  }
  func.func @transform_1(%arg0: i32, %arg1: i32) -> (i32, i32, i32, i32) {
    %c1_i32 = arith.constant 1 : i32
    %0 = arith.addi %arg1, %c1_i32 : i32
    %c0_i32 = arith.constant 0 : i32
    %c0_i32_0 = arith.constant 0 : i32
    %c0_i32_1 = arith.constant 0 : i32
    return %arg0, %0, %c0_i32, %c0_i32_0 : i32, i32, i32, i32
  }
  func.func @transform_2(%arg0: i32, %arg1: i32) -> (i32, i32, i32, i32) {
    %c2_i32 = arith.constant 2 : i32
    %0 = arith.addi %arg1, %c2_i32 : i32
    %c0_i32 = arith.constant 0 : i32
    %c0_i32_0 = arith.constant 0 : i32
    %c0_i32_1 = arith.constant 0 : i32
    return %arg0, %0, %c0_i32, %c0_i32_0 : i32, i32, i32, i32
  }
  func.func @transform_3(%arg0: i32, %arg1: i32) -> (i32, i32, i32) {
    %c0_i32 = arith.constant 0 : i32
    %c0_i32_0 = arith.constant 0 : i32
    %c0_i32_1 = arith.constant 0 : i32
    %c0_i32_2 = arith.constant 0 : i32
    return %c0_i32, %c0_i32_0, %c0_i32_1 : i32, i32, i32
  }
  func.func @transform_4(%arg0: i32, %arg1: i32) -> (i32, i32) {
    %c0_i32 = arith.constant 0 : i32
    %c0_i32_0 = arith.constant 0 : i32
    %c0_i32_1 = arith.constant 0 : i32
    return %c0_i32, %c0_i32_0 : i32, i32
  }
  func.func @transform_5(%arg0: i32, %arg1: i32) -> (i32, i32, i32, i32) {
    %c0_i32 = arith.constant 0 : i32
    %c0_i32_0 = arith.constant 0 : i32
    %c0_i32_1 = arith.constant 0 : i32
    return %arg0, %arg1, %c0_i32, %c0_i32_0 : i32, i32, i32, i32
  }
  func.func @transform_6(%arg0: i32, %arg1: i32) -> (i32, i32, i32, i32) {
    %c0_i32 = arith.constant 0 : i32
    %c0_i32_0 = arith.constant 0 : i32
    %c0_i32_1 = arith.constant 0 : i32
    return %arg0, %arg1, %c0_i32, %c0_i32_0 : i32, i32, i32, i32
  }
}

</mosaic_0001>

<bundles_post_ra>
// kernel: focal_conv_up_block_forward.3
= control target key start
LH: loop header
LB: loop body
LE: loop exit
PB: predicated region body
PF: predicated region fallthrough
CT: control target
= control target key end

     0   :  { %s1384_s15 = smov 0   ;;  %s1386_s16 = smov 0   ;;  %s1599_s0 = inlined_call_operand.vmem [shape: bf16[2,9,128,64], index: 0, kind: input, shape index: {}, may-alias: {0,1}]   ;;  %s1600_s1 = inlined_call_operand.vmem [shape: bf16[2,9,128,64], index: 1, kind: input, shape index: {}, may-alias: {0,1}]   ;;  %s1601_s2 = inlined_call_operand.vmem [shape: bf16[2,128,128], index: 2, kind: input, shape index: {}]   ;;  %s1602_s3 = inlined_call_operand.vmem [shape: f32[128,1], index: 3, kind: input, shape index: {}]   ;;  %s1603_s4 = inlined_call_operand.vmem [shape: bf16[2,8,128,64], index: 4, kind: output, shape index: {}]  }
   0x1   :  { %s1388_s17 = smov 0   ;;  %s1390_s18 = smov 0  }
   0x2   :  { %s1392_s19 = smov 0  }
   0x3 LB: > { %s23_s20 = sadd.s32 1, %s1348_s17  ;;  %s26_s21 = sadd.s32 1, %s1352_s18  ;;  %s1356_s19 = sphi %s1392_s19, %s14_s19   ;;  %s1352_s18 = sphi %s1390_s18, %s1607_s18   ;;  %s1348_s17 = sphi %s1388_s17, %s1606_s17   ;;  %s1344_s16 = sphi %s1386_s16, %s1605_s16   ;;  %s1340_s15 = sphi %s1384_s15, %s1604_s15  }
   0x4   : > { %p24_p0 = scmp.ge.s32.totalorder %s23_s20, 8  ;;  %p1040_p1 = scmp.ge.s32.totalorder %s1356_s19, 1 }
   0x5   : > { %p202_p2 = scmp.lt.s32.totalorder %s1356_s19, 17 }
   0x6   : > { %s1609_s20 = smov (%p24_p0, %s23_s20), 0  ;;  %s1611_s21 = smov (!%p24_p0, %s26_s21), %s1352_s18 }
   0x7   : > { %p203_p3 = pnand %p1040_p1, %p202_p2  ;;  %p28_p4 = scmp.ge.s32.totalorder %s1611_s21, 2 }
   0x8   : > { %p246_p5 = scmp.lt.s32.totalorder (!%p203_p3), %s1344_s16, 1  ;;  %s255_s22 = sadd.s32 (!%p203_p3), 1, %s1340_s15  ;;  %v1302_v0 = vld [vmem:[%s1601_s2 + $0x40] sm:$0xff] (!%p203_p3)   ;;  %v1358_v3 = vmov (!%p203_p3), 0   ;;  %v729_v16 = vld [vmem:[%s1602_s3 + $0x10] sm:$0xff] (!%p203_p3)  ;;  %v730_v19 = vld [vmem:[%s1602_s3 + $0x18] sm:$0xff] (!%p203_p3) }
   0x9   : > { %s1613_s21 = smov (%p28_p4, %s1611_s21), 0  ;;  %206 = sbr.rel (%p203_p3) target bundleno = 303 (0x12f), region = 36 }
   0xa   : > { %p258_p6 = scmp.lt.s32.totalorder (!%p203_p3), %s255_s22, 8  ;;  %v1303_v1 = vld [vmem:[%s1601_s2] sm:$0xff] (!%p203_p3)   ;;  %1178 = vmatprep.mubr.bf16.mxu1 (!%p203_p3), %v1302_v0  ;;  %p248_p7 = scmp.lt.s32.totalorder (!%p203_p3), %s1340_s15, 8  ;;  %1285 = vset.pattern.permute.xlu1 (!%p203_p3), %v1358_v3  ;;  %v728_v21 = vld [vmem:[%s1602_s3 + $0x8] sm:$0xff] (!%p203_p3)  ;;  %v1306_v26 = vld [vmem:[%s1601_s2 + $0x50] sm:$0xff] (!%p203_p3)   ;;  %vm903_vm0 = vcmask (!%p203_p3), 519168  }
   0xb   : > { %1210 = vmatprep.mubr.bf16.mxu0 (!%p203_p3), %v1303_v1  ;;  %1284 = vset.pattern.permute.xlu0 (!%p203_p3), %v1358_v3  ;;  %v727_v17 = vld [vmem:[%s1602_s3] sm:$0xff] (!%p203_p3)  ;;  %v732_v22 = vld [vmem:[%s1602_s3 + $0x28] sm:$0xff] (!%p203_p3)  ;;  %v734_v27 = vld [vmem:[%s1602_s3 + $0x38] sm:$0xff] (!%p203_p3)  ;;  %p268_p8 = scmp.lt.s32.totalorder (!%p203_p3), %s1340_s15, 7 }
   0xc   : > { %755 = vperm.xlu1 (!%p203_p3), %1285, %v729_v16   ;;  %745 = vperm.xlu0 (!%p203_p3), %1284, %v727_v17   ;;  %v1304_v24 = vld [vmem:[%s1601_s2 + $0x48] sm:$0xff] (!%p203_p3)   ;;  %v731_v25 = vld [vmem:[%s1602_s3 + $0x20] sm:$0xff] (!%p203_p3)  ;;  %v733_v28 = vld [vmem:[%s1602_s3 + $0x30] sm:$0xff] (!%p203_p3) }
   0xd   : > { %v1305_v29 = vld [vmem:[%s1601_s2 + $0x8] sm:$0xff] (!%p203_p3)   ;;  %v1307_v30 = vld [vmem:[%s1601_s2 + $0x10] sm:$0xff] (!%p203_p3)   ;;  %v1308_v32 = vld [vmem:[%s1601_s2 + $0x58] sm:$0xff] (!%p203_p3)  }
   0xe   : > { %v736_v31 = vld [vmem:[%s1602_s3 + $0x48] sm:$0xff] (!%p203_p3)  ;;  %v735_v33 = vld [vmem:[%s1602_s3 + $0x40] sm:$0xff] (!%p203_p3)  ;;  %v738_v35 = vld [vmem:[%s1602_s3 + $0x58] sm:$0xff] (!%p203_p3) }
   0xf   : > { %v1310_v34 = vld [vmem:[%s1601_s2 + $0x60] sm:$0xff] (!%p203_p3)   ;;  %v737_v36 = vld [vmem:[%s1602_s3 + $0x50] sm:$0xff] (!%p203_p3)  ;;  %v1309_v37 = vld [vmem:[%s1601_s2 + $0x18] sm:$0xff] (!%p203_p3)  }
  0x10   : > { %s1615_s16 = smov (!%p246_p5, %s1344_s16), 1  ;;  %s1617_s22 = smov (!%p258_p6, %s255_s22), 8  ;;  %760 = vperm.xlu1 %1285, %v730_v19   ;;  %750 = vperm.xlu0 %1284, %v728_v21   ;;  %v1311_v38 = vld [vmem:[%s1601_s2 + $0x20] sm:$0xff]   ;;  %v740_v39 = vld [vmem:[%s1602_s3 + $0x68] sm:$0xff]  ;;  %v1314_v42 = vld [vmem:[%s1601_s2 + $0x70] sm:$0xff]  }
  0x11   : > { %s1242_s27 = smul.u32 144, %s1615_s16  ;;  %s1043_s28 = sshll.u32 %s1617_s22, 4  ;;  %v1312_v40 = vld [vmem:[%s1601_s2 + $0x68] sm:$0xff]   ;;  %v739_v41 = vld [vmem:[%s1602_s3 + $0x60] sm:$0xff]  ;;  %v742_v43 = vld [vmem:[%s1602_s3 + $0x78] sm:$0xff] }
  0x12   : > { %s249_s8 = scalar_select %p248_p7, %s1340_s15, 8  ;;  %v741_v44 = vld [vmem:[%s1602_s3 + $0x70] sm:$0xff]  ;;  %v1313_v45 = vld [vmem:[%s1601_s2 + $0x28] sm:$0xff]   ;;  %v1316_v47 = vld [vmem:[%s1601_s2 + $0x78] sm:$0xff]  }
  0x13   : > { %s262_s29 = sadd.s32 %s1242_s27, %s1043_s28  ;;  %v1315_v46 = vld [vmem:[%s1601_s2 + $0x30] sm:$0xff]   ;;  %v1317_v48 = vld [vmem:[%s1601_s2 + $0x38] sm:$0xff]   ;;  %s1619_s15 = smov (!%p268_p8, %s1340_s15), 7 }
  0x14   : > { %s1044_s30 = sshll.u32 %s262_s29, 2  ;;  %s1041_s9 = sshll.u32 %s249_s8, 4  ;;  %770 = vperm.xlu1 %1285, %v732_v22   ;;  %765 = vperm.xlu0 %1284, %v731_v25  }
  0x15   : > { %s1430_s7 = scalar_lea.vmem %s1600_s1, %s1044_s30  ;;  %s252_s10 = sadd.s32 %s1242_s27, %s1041_s9 }
  0x16   : > { %v1286_v2 = vld [vmem:[%s1430_s7] sm:$0xff]   ;;  %v1288_v4 = vld [vmem:[%s1430_s7 + $0x8] sm:$0xff]   ;;  %s1042_s11 = sshll.u32 %s252_s10, 2  ;;  %v1290_v5 = vld [vmem:[%s1430_s7 + $0x10] sm:$0xff]   ;;  %s1045_s25 = sshll.u32 %s1619_s15, 4 }
  0x17   : > { %1162 = vmatprep.subr.bf16.mxu1 %v1286_v2  ;;  %s1439_s14 = scalar_lea.vmem %s1599_s0, %s1042_s11  ;;  %v1292_v8 = vld [vmem:[%s1430_s7 + $0x18] sm:$0xff]   ;;  %v1294_v10 = vld [vmem:[%s1430_s7 + $0x20] sm:$0xff]   ;;  %v1296_v12 = vld [vmem:[%s1430_s7 + $0x28] sm:$0xff]   ;;  %s1046_s26 = sshll.u32 %s1615_s16, 7 }
  0x18   : > { %1163 = vmatpush3.bf16.msra.mxu1 %v1286_v2  ;;  %v1287_v6 = vld [vmem:[%s1439_s14] sm:$0xff]   ;;  %v1289_v7 = vld [vmem:[%s1439_s14 + $0x8] sm:$0xff]   ;;  %v1291_v9 = vld [vmem:[%s1439_s14 + $0x10] sm:$0xff]   ;;  %780 = vperm.xlu1 %1285, %v734_v27   ;;  %s272_s27 = sadd.s32 %s1046_s26, %s1045_s25 }
  0x19   : > { %1164 = vmatprep.subr.bf16.mxu1 %v1288_v4  ;;  %1194 = vmatprep.subr.bf16.mxu0 %v1287_v6  ;;  %v1293_v11 = vld [vmem:[%s1439_s14 + $0x18] sm:$0xff]   ;;  %v1295_v13 = vld [vmem:[%s1439_s14 + $0x20] sm:$0xff]   ;;  %v1298_v14 = vld [vmem:[%s1430_s7 + $0x30] sm:$0xff]   ;;  %s1047_s28 = sshll.u32 %s272_s27, 2 }
  0x1a   : > { %1195 = vmatpush3.bf16.msra.mxu0 %v1287_v6  ;;  %v1297_v15 = vld [vmem:[%s1439_s14 + $0x28] sm:$0xff]   ;;  %v1300_v18 = vld [vmem:[%s1430_s7 + $0x38] sm:$0xff]   ;;  %v1299_v20 = vld [vmem:[%s1439_s14 + $0x30] sm:$0xff]   ;;  %775 = vperm.xlu0 %1284, %v733_v28   ;;  %s1550_s16 = scalar_lea.vmem %s1603_s4, %s1047_s28 }
  0x1b   : > { %1196 = vmatprep.subr.bf16.mxu0 %v1289_v7  ;;  %v1301_v23 = vld [vmem:[%s1439_s14 + $0x38] sm:$0xff]  }
  0x1c   : > { %1165 = vmatpush3.bf16.msra.mxu1 %v1288_v4  ;;  %790 = vperm.xlu1 %1285, %v736_v31  }
  0x1d   : > { %1166 = vmatprep.subr.bf16.mxu1 %v1290_v5 }
  0x1e   : > { %1197 = vmatpush3.bf16.msra.mxu0 %v1289_v7  ;;  %785 = vperm.xlu0 %1284, %v735_v33  }
  0x1f   : > { %1198 = vmatprep.subr.bf16.mxu0 %v1291_v9 }
  0x20   : > { %1167 = vmatpush3.bf16.msra.mxu1 %v1290_v5  ;;  %800 = vperm.xlu1 %1285, %v738_v35  }
  0x21   : > { %1168 = vmatprep.subr.bf16.mxu1 %v1292_v8 }
  0x22   : > { %1199 = vmatpush3.bf16.msra.mxu0 %v1291_v9  ;;  %795 = vperm.xlu0 %1284, %v737_v36  }
  0x23   : > { %1200 = vmatprep.subr.bf16.mxu0 %v1293_v11 }
  0x24   : > { %1169 = vmatpush3.bf16.msra.mxu1 %v1292_v8  ;;  %810 = vperm.xlu1 %1285, %v740_v39  }
  0x25   : > { %1170 = vmatprep.subr.bf16.mxu1 %v1294_v10 }
  0x26   : > { %1201 = vmatpush3.bf16.msra.mxu0 %v1293_v11  ;;  %805 = vperm.xlu0 %1284, %v739_v41  }
  0x27   : > { %1202 = vmatprep.subr.bf16.mxu0 %v1295_v13 }
  0x28   : > { %1171 = vmatpush3.bf16.msra.mxu1 %v1294_v10  ;;  %820 = vperm.xlu1 %1285, %v742_v43  }
  0x29   : > { %1172 = vmatprep.subr.bf16.mxu1 %v1296_v12 }
  0x2a   : > { %1203 = vmatpush3.bf16.msra.mxu0 %v1295_v13  ;;  %815 = vperm.xlu0 %1284, %v741_v44  }
  0x2b   : > { %1204 = vmatprep.subr.bf16.mxu0 %v1297_v15 }
  0x2c   : > { %1173 = vmatpush3.bf16.msra.mxu1 %v1296_v12 }
  0x2d   : > { %1174 = vmatprep.subr.bf16.mxu1 %v1298_v14 }
  0x2e   : > { %1205 = vmatpush3.bf16.msra.mxu0 %v1297_v15 }
  0x2f   : > { %1206 = vmatprep.subr.bf16.mxu0 %v1299_v20 }
  0x30   : > { %1175 = vmatpush3.bf16.msra.mxu1 %v1298_v14 }
  0x31   : > { %1176 = vmatprep.subr.bf16.mxu1 %v1300_v18 }
  0x32   : > { %1207 = vmatpush3.bf16.msra.mxu0 %v1299_v20 }
  0x33   : > { %1208 = vmatprep.subr.bf16.mxu0 %v1301_v23 }
  0x34   : > { %1177 = vmatpush3.bf16.msra.mxu1 %v1300_v18 }
  0x36   : > { %1209 = vmatpush3.bf16.msra.mxu0 %v1301_v23 }
  0x37   : > { %1179 = vmatmul.mubr.bf16.vlgmr.msra.gmra.mrb[0].mxu1 %v1304_v24 }
  0x38   : > { %1182 = vmatprep.mubr.bf16.mxu1 %v1306_v26 }
  0x39   : > { %1211 = vmatmul.mubr.bf16.vlgmr.msra.gmra.mrb[0].mxu0 %v1305_v29 }
  0x3a   : > { %1214 = vmatprep.mubr.bf16.mxu0 %v1307_v30 }
  0x3f   : > { %1183 = vmatmul.mubr.bf16.gmra.mrb[4].mxu1 %v1308_v32 }
  0x40   : > { %1186 = vmatprep.mubr.bf16.mxu1 %v1310_v34 }
  0x41   : > { %1215 = vmatmul.mubr.bf16.gmra.mrb[4].mxu0 %v1309_v37 }
  0x42   : > { %1218 = vmatprep.mubr.bf16.mxu0 %v1311_v38 }
  0x47   : > { %1187 = vmatmul.mubr.bf16.gmra.mrb[8].mxu1 %v1312_v40 }
  0x48   : > { %1190 = vmatprep.mubr.bf16.mxu1 %v1314_v42 }
  0x49   : > { %1219 = vmatmul.mubr.bf16.gmra.mrb[8].mxu0 %v1313_v45 }
  0x4a   : > { %1222 = vmatprep.mubr.bf16.mxu0 %v1315_v46 }
  0x4f   : > { %1191 = vmatmul.mubr.bf16.gmra.mrb[12].mxu1 %v1316_v47 }
  0x51   : > { %1223 = vmatmul.mubr.bf16.gmra.mrb[12].mxu0 %v1317_v48 }
  0x8b   : > { %v756_v49 = vpop.permute.xlu1 %755  ;;  %v746_v50 = vpop.permute.xlu0 %745 }
  0x8f   : > { %v761_v51 = vpop.permute.xlu1 %760  ;;  %v751_v52 = vpop.permute.xlu0 %750 }
  0x93   : > { %v771_v53 = vpop.permute.xlu1 %770  ;;  %v766_v55 = vpop.permute.xlu0 %765 }
  0x97   : > { %v781_v59 = vpop.permute.xlu1 %780 }
  0x99   : > { %v776_v61 = vpop.permute.xlu0 %775 }
  0x9b   : > { %v791_v19 = vpop.permute.xlu1 %790 }
  0x9d   : > { %v786_v16 = vpop.permute.xlu0 %785 }
  0x9f   : > { %v801_v39 = vpop.permute.xlu1 %800 }
  0xa1   : > { %v796_v35 = vpop.permute.xlu0 %795 }
 0x10a   : > { %v1180_v54 = vpop.f32.mrb[0].mxu1 }
 0x10b   : > { %v471_v56 = vpop.f32.mrb[1].mxu1 }
 0x10c   : > { %v1181_v57 = vpop.f32.mrb[2].mxu1  ;;  %v1212_v60 = vpop.f32.mrb[0].mxu0 }
 0x10d   : > { %v474_v58 = vpop.f32.mrb[3].mxu1  ;;  %v673_v62 = vadd.f32 %v1212_v60, %v1180_v54  ;;  %v664_v63 = vpop.f32.mrb[1].mxu0 }
 0x10e   : > { %v665_v0 = vadd.f32 %v664_v63, %v471_v56  ;;  %v1213_v1 = vpop.f32.mrb[2].mxu0 }
 0x10f   : > { %v825_v3 = vadd.f32 %v756_v49, %v673_v62  ;;  %v676_v4 = vadd.f32 %v1213_v1, %v1181_v57  ;;  %v667_v5 = vpop.f32.mrb[3].mxu0 }
 0x110   : > { %v823_v7 = vadd.f32 %v746_v50, %v665_v0  ;;  %v668_v8 = vadd.f32 %v667_v5, %v474_v58  ;;  %v811_v58 = vpop.permute.xlu1 %810 }
 0x111   : > { %v1116_v10 = vpack.c.bf16 %v825_v3, %v825_v3  ;;  %v826_v11 = vadd.f32 %v761_v51, %v676_v4  ;;  %v806_v51 = vpop.permute.xlu0 %805 }
 0x112   : > { %v1184_v2 = vpop.f32.mrb[4].mxu1  ;;  %v1114_v13 = vpack.c.bf16 %v823_v7, %v823_v7  ;;  %v824_v14 = vadd.f32 %v751_v52, %v668_v8 }
 0x113   : > { %v487_v6 = vpop.f32.mrb[5].mxu1  ;;  %906 = vst.msk [vmem:[%s1550_s16 + $0x8] sm:$0xf] %vm903_vm0, %v1116_v10  ;;  %v1117_v15 = vpack.c.bf16 %v826_v11, %v826_v11 }
 0x114   : > { %v1185_v9 = vpop.f32.mrb[6].mxu1  ;;  %904 = vst.msk [vmem:[%s1550_s16] sm:$0xf] %vm903_vm0, %v1114_v13  ;;  %v1115_v17 = vpack.c.bf16 %v824_v14, %v824_v14  ;;  %v1216_v18 = vpop.f32.mrb[4].mxu0 }
 0x115   : > { %v490_v12 = vpop.f32.mrb[7].mxu1  ;;  %907 = vst.msk [vmem:[%s1550_s16 + $0xc] sm:$0xf] %vm903_vm0, %v1117_v15  ;;  %v689_v20 = vadd.f32 %v1216_v18, %v1184_v2  ;;  %v680_v21 = vpop.f32.mrb[5].mxu0 }
 0x116   : > { %905 = vst.msk [vmem:[%s1550_s16 + $0x4] sm:$0xf] %vm903_vm0, %v1115_v17  ;;  %v681_v22 = vadd.f32 %v680_v21, %v487_v6  ;;  %v1217_v23 = vpop.f32.mrb[6].mxu0  ;;  %v816_v2 = vpop.permute.xlu0 %815 }
 0x117   : > { %v829_v25 = vadd.f32 %v776_v61, %v689_v20  ;;  %v692_v26 = vadd.f32 %v1217_v23, %v1185_v9  ;;  %v683_v27 = vpop.f32.mrb[7].mxu0  ;;  %v821_v8 = vpop.permute.xlu1 %820 }
 0x118   : > { %v827_v29 = vadd.f32 %v766_v55, %v681_v22  ;;  %v684_v30 = vadd.f32 %v683_v27, %v490_v12 }
 0x119   : > { %v1120_v32 = vpack.c.bf16 %v829_v25, %v829_v25  ;;  %v830_v33 = vadd.f32 %v781_v59, %v692_v26 }
 0x11a   : > { %v1188_v24 = vpop.f32.mrb[8].mxu1  ;;  %v1118_v36 = vpack.c.bf16 %v827_v29, %v827_v29  ;;  %v828_v37 = vadd.f32 %v771_v53, %v684_v30 }
 0x11b   : > { %v503_v28 = vpop.f32.mrb[9].mxu1  ;;  %910 = vst.msk [vmem:[%s1550_s16 + $0x18] sm:$0xf] %vm903_vm0, %v1120_v32  ;;  %v1121_v38 = vpack.c.bf16 %v830_v33, %v830_v33 }
 0x11c   : > { %v1189_v31 = vpop.f32.mrb[10].mxu1  ;;  %908 = vst.msk [vmem:[%s1550_s16 + $0x10] sm:$0xf] %vm903_vm0, %v1118_v36  ;;  %v1119_v40 = vpack.c.bf16 %v828_v37, %v828_v37  ;;  %v1220_v41 = vpop.f32.mrb[8].mxu0 }
 0x11d   : > { %v506_v34 = vpop.f32.mrb[11].mxu1  ;;  %911 = vst.msk [vmem:[%s1550_s16 + $0x1c] sm:$0xf] %vm903_vm0, %v1121_v38  ;;  %v705_v42 = vadd.f32 %v1220_v41, %v1188_v24  ;;  %v696_v43 = vpop.f32.mrb[9].mxu0 }
 0x11e   : > { %909 = vst.msk [vmem:[%s1550_s16 + $0x14] sm:$0xf] %vm903_vm0, %v1119_v40  ;;  %v697_v44 = vadd.f32 %v696_v43, %v503_v28  ;;  %v1221_v45 = vpop.f32.mrb[10].mxu0 }
 0x11f   : > { %v833_v47 = vadd.f32 %v796_v35, %v705_v42  ;;  %v708_v48 = vadd.f32 %v1221_v45, %v1189_v31  ;;  %v699_v49 = vpop.f32.mrb[11].mxu0 }
 0x120   : > { %v831_v52 = vadd.f32 %v786_v16, %v697_v44  ;;  %v700_v53 = vadd.f32 %v699_v49, %v506_v34 }
 0x121   : > { %v1124_v55 = vpack.c.bf16 %v833_v47, %v833_v47  ;;  %v834_v56 = vadd.f32 %v801_v39, %v708_v48 }
 0x122   : > { %v1192_v46 = vpop.f32.mrb[12].mxu1  ;;  %v1122_v59 = vpack.c.bf16 %v831_v52, %v831_v52  ;;  %v832_v60 = vadd.f32 %v791_v19, %v700_v53 }
 0x123   : > { %v519_v50 = vpop.f32.mrb[13].mxu1  ;;  %914 = vst.msk [vmem:[%s1550_s16 + $0x28] sm:$0xf] %vm903_vm0, %v1124_v55  ;;  %v1125_v61 = vpack.c.bf16 %v834_v56, %v834_v56 }
 0x124   : > { %v1193_v54 = vpop.f32.mrb[14].mxu1  ;;  %912 = vst.msk [vmem:[%s1550_s16 + $0x20] sm:$0xf] %vm903_vm0, %v1122_v59  ;;  %v1123_v62 = vpack.c.bf16 %v832_v60, %v832_v60  ;;  %v1224_v63 = vpop.f32.mrb[12].mxu0 }
 0x125   : > { %v522_v57 = vpop.f32.mrb[15].mxu1  ;;  %915 = vst.msk [vmem:[%s1550_s16 + $0x2c] sm:$0xf] %vm903_vm0, %v1125_v61  ;;  %v721_v0 = vadd.f32 %v1224_v63, %v1192_v46  ;;  %v712_v1 = vpop.f32.mrb[13].mxu0 }
 0x126   : > { %913 = vst.msk [vmem:[%s1550_s16 + $0x24] sm:$0xf] %vm903_vm0, %v1123_v62  ;;  %v713_v3 = vadd.f32 %v712_v1, %v519_v50  ;;  %v1225_v4 = vpop.f32.mrb[14].mxu0 }
 0x127   : > { %v837_v5 = vadd.f32 %v816_v2, %v721_v0  ;;  %v724_v6 = vadd.f32 %v1225_v4, %v1193_v54  ;;  %v715_v7 = vpop.f32.mrb[15].mxu0 }
 0x128   : > { %v835_v9 = vadd.f32 %v806_v51, %v713_v3  ;;  %v716_v10 = vadd.f32 %v715_v7, %v522_v57 }
 0x129   : > { %v1128_v11 = vpack.c.bf16 %v837_v5, %v837_v5  ;;  %v838_v12 = vadd.f32 %v821_v8, %v724_v6 }
 0x12a   : > { %v1126_v13 = vpack.c.bf16 %v835_v9, %v835_v9  ;;  %v836_v14 = vadd.f32 %v811_v58, %v716_v10 }
 0x12b   : > { %918 = vst.msk [vmem:[%s1550_s16 + $0x38] sm:$0xf] %vm903_vm0, %v1128_v11  ;;  %v1129_v15 = vpack.c.bf16 %v838_v12, %v838_v12 }
 0x12c   : > { %916 = vst.msk [vmem:[%s1550_s16 + $0x30] sm:$0xf] %vm903_vm0, %v1126_v13  ;;  %v1127_v16 = vpack.c.bf16 %v836_v14, %v836_v14 }
 0x12d   : > { %919 = vst.msk [vmem:[%s1550_s16 + $0x3c] sm:$0xf] %vm903_vm0, %v1129_v15 }
 0x12e   : > { %917 = vst.msk [vmem:[%s1550_s16 + $0x34] sm:$0xf] %vm903_vm0, %v1127_v16 }
 0x12f PF: > { %s14_s19 = sadd.s32 1, %s1356_s19   ;;  %s1604_s15 = smov %s1348_s17 }
 0x130   : > { %p11_p9 = scmp.ge.s32.totalorder %s14_s19, 18   ;;  %s1605_s16 = smov %s1352_s18 }
 0x131   : > { %s1606_s17 = smov %s1609_s20  ;;  %s1607_s18 = smov %s1613_s21 }
 0x132   :  { %13 = sbr.rel (!%p11_p9) target bundleno = 3 (0x3), region = 70 }

// kernel: focal_conv_up_block_forward.4
= control target key start
LH: loop header
LB: loop body
LE: loop exit
PB: predicated region body
PF: predicated region fallthrough
CT: control target
= control target key end

     0   :  { %s2226_s27 = smov 0   ;;  %s2228_s28 = smov 0   ;;  %s2489_s0 = inlined_call_operand.vmem [shape: bf16[2,18,288,256], index: 0, kind: input, shape index: {}, may-alias: {0,1,2}]   ;;  %s2490_s1 = inlined_call_operand.vmem [shape: bf16[2,18,288,256], index: 1, kind: input, shape index: {}, may-alias: {0,1,2}]   ;;  %s2491_s2 = inlined_call_operand.vmem [shape: bf16[2,18,288,256], index: 2, kind: input, shape index: {}, may-alias: {0,1,2}]   ;;  %s2492_s3 = inlined_call_operand.vmem [shape: bf16[3,16,288], index: 3, kind: input, shape index: {}]   ;;  %s2493_s4 = inlined_call_operand.vmem [shape: f32[16,1], index: 4, kind: input, shape index: {}]   ;;  %s2494_s5 = inlined_call_operand.vmem [shape: bf16[16,32], index: 5, kind: input, shape index: {}]   ;;  %s2495_s6 = inlined_call_operand.vmem [shape: f32[16,1], index: 6, kind: input, shape index: {}]   ;;  %s2496_s7 = inlined_call_operand.vmem [shape: bf16[2,16,16,256], index: 7, kind: output, shape index: {0}]   ;;  %s2497_s8 = inlined_call_operand.vmem [shape: f32[2,16,16,256], index: 8, kind: output, shape index: {1}]  }
   0x1   :  { %s2230_s29 = smov 0   ;;  %s2232_s30 = smov 0  }
   0x2   :  { %s2234_s9 = smov 0  }
   0x3 LB: > { %s28_s10 = sadd.s32 1, %s2170_s29  ;;  %s31_s11 = sadd.s32 1, %s2174_s30  ;;  %s2178_s9 = sphi %s2234_s9, %s19_s9   ;;  %s2174_s30 = sphi %s2232_s30, %s2501_s30   ;;  %s2170_s29 = sphi %s2230_s29, %s2500_s29   ;;  %s2166_s28 = sphi %s2228_s28, %s2499_s28   ;;  %s2162_s27 = sphi %s2226_s27, %s2498_s27  }
   0x4   : > { %p29_p0 = scmp.ge.s32.totalorder %s28_s10, 16  ;;  %p1748_p1 = scmp.ge.s32.totalorder %s2178_s9, 1 }
   0x5   : > { %p327_p2 = scmp.lt.s32.totalorder %s2178_s9, 33 }
   0x6   : > { %s2503_s10 = smov (%p29_p0, %s28_s10), 0  ;;  %s2505_s11 = smov (!%p29_p0, %s31_s11), %s2174_s30 }
   0x7   : > { %p328_p3 = pnand %p1748_p1, %p327_p2  ;;  %p33_p4 = scmp.ge.s32.totalorder %s2505_s11, 2 }
   0x8   : > { %p398_p5 = scmp.lt.s32.totalorder (!%p328_p3), %s2166_s28, 1  ;;  %s407_s12 = sadd.s32 (!%p328_p3), 1, %s2162_s27  ;;  %v2180_v0 = vmov (!%p328_p3), 0   ;;  %v2065_v1 = vld [vmem:[%s2492_s3 + $0x1c] ss:$12 sps:$4 sm:$0xff] (!%p328_p3)   ;;  %vm724_vm0 = vcmask (!%p328_p3), 261120  }
   0x9   : > { %s2507_s11 = smov (%p33_p4, %s2505_s11), 0  ;;  %331 = sbr.rel (%p328_p3) target bundleno = 378 (0x17a), region = 48 }
   0xa   : > { %p410_p6 = scmp.lt.s32.totalorder (!%p328_p3), %s407_s12, 17  ;;  %803 = vmatprep.mubr.bf16.mxu0 (!%p328_p3), %v2180_v0  ;;  %p400_p7 = scmp.lt.s32.totalorder (!%p328_p3), %s2162_s27, 17  ;;  %1963 = vset.pattern.permute.xlu0 (!%p328_p3), %v2180_v0  ;;  %v1983_v13 = vld [vmem:[%s2492_s3 + $0x20] ss:$12 sps:$4 sm:$0xff] (!%p328_p3)   ;;  %v1996_v23 = vld [vmem:[%s2492_s3 + $0x8] ss:$12 sps:$4 sm:$0xff] (!%p328_p3)  }
   0xb   : > { %1964 = vset.pattern.permute.xlu1 (!%p328_p3), %v2180_v0  ;;  %s418_s17 = sadd.s32 (!%p328_p3), 2, %s2162_s27  ;;  %760 = vmatprep.mubr.bf16.mxu1 (!%p328_p3), %v2065_v1  ;;  %v2092_v26 = vld [vmem:[%s2492_s3 + $0x34] ss:$12 sps:$4 sm:$0xff] (!%p328_p3)   ;;  %p431_p9 = scmp.lt.s32.totalorder (!%p328_p3), %s2162_s27, 15 }
   0xc   : > { %p421_p8 = scmp.lt.s32.totalorder (!%p328_p3), %s418_s17, 17 }
  0x10   : > { %s2509_s28 = smov (!%p398_p5, %s2166_s28), 1  ;;  %s2511_s12 = smov (!%p410_p6, %s407_s12), 17 }
  0x11   : > { %s2266_s13 = smul.u32 1296, %s2509_s28  ;;  %s2513_s17 = smov (!%p421_p8, %s418_s17), 17 }
  0x12   : > { %s1920_s16 = smul.u32 72, %s2511_s12 }
  0x13   : > { %s401_s18 = scalar_select %p400_p7, %s2162_s27, 17 }
  0x14   : > { %s414_s19 = sadd.s32 %s1920_s16, %s2266_s13  ;;  %s1921_s16 = smul.u32 72, %s2513_s17 }
  0x15   : > { %s1750_s20 = sshll.u32 %s414_s19, 2  ;;  %s1918_s21 = smul.u32 72, %s401_s18 }
  0x16   : > { %s2277_s24 = scalar_lea.vmem %s2490_s1, %s1750_s20  ;;  %s425_s20 = sadd.s32 %s1921_s16, %s2266_s13 }
  0x17   : > { %v1965_v2 = vld [vmem:[%s2277_s24 + $0x4] ss:$8 sps:$4 sm:$0xff]   ;;  %s404_s25 = sadd.s32 %s2266_s13, %s1918_s21  ;;  %v1969_v4 = vld [vmem:[%s2277_s24] ss:$8 sps:$4 sm:$0xff]   ;;  %v1971_v6 = vld [vmem:[%s2277_s24 + $0x14] ss:$8 sps:$4 sm:$0xff]  }
  0x18   : > { %v1967_v3 = vld [vmem:[%s2277_s24 + $0x104] ss:$8 sps:$4 sm:$0xff]   ;;  %s1749_s26 = sshll.u32 %s404_s25, 2  ;;  %728 = vmatprep.subr.bf16.mxu1 %v1965_v2  ;;  %v1970_v5 = vld [vmem:[%s2277_s24 + $0x100] ss:$8 sps:$4 sm:$0xff]   ;;  %s1751_s21 = sshll.u32 %s425_s20, 2 }
  0x19   : > { %771 = vmatprep.subr.bf16.mxu0 %v1967_v3  ;;  %729 = vmatpush1.bf16.msra.mxu1 %v1969_v4  ;;  %v1973_v7 = vld [vmem:[%s2277_s24 + $0x114] ss:$8 sps:$4 sm:$0xff]   ;;  %v1975_v8 = vld [vmem:[%s2277_s24 + $0x10] ss:$8 sps:$4 sm:$0xff]   ;;  %s2290_s15 = scalar_lea.vmem %s2489_s0, %s1749_s26  ;;  %v1977_v10 = vld [vmem:[%s2277_s24 + $0x24] ss:$8 sps:$4 sm:$0xff]   ;;  %s2306_s23 = scalar_lea.vmem %s2491_s2, %s1751_s21 }
  0x1a   : > { %772 = vmatpush1.bf16.msra.mxu0 %v1970_v5  ;;  %730 = vmatprep.subr.bf16.mxu1 %v1971_v6  ;;  %v1976_v9 = vld [vmem:[%s2277_s24 + $0x110] ss:$8 sps:$4 sm:$0xff]   ;;  %v1979_v11 = vld [vmem:[%s2290_s15 + $0x100] ss:$8 sps:$4 sm:$0xff]   ;;  %v1981_v12 = vld [vmem:[%s2290_s15 + $0x104] ss:$8 sps:$4 sm:$0xff]  }
  0x1b   : > { %773 = vmatprep.subr.bf16.mxu0 %v1973_v7  ;;  %v1982_v14 = vld [vmem:[%s2277_s24 + $0x20] ss:$8 sps:$4 sm:$0xff]   ;;  %v1984_v15 = vld [vmem:[%s2277_s24 + $0x34] ss:$8 sps:$4 sm:$0xff]   ;;  %v1986_v17 = vld [vmem:[%s2290_s15 + $0x110] ss:$8 sps:$4 sm:$0xff]  }
  0x1c   : > { %v1988_v16 = vld [vmem:[%s2290_s15 + $0x114] ss:$8 sps:$4 sm:$0xff]   ;;  %v1989_v18 = vld [vmem:[%s2277_s24 + $0x30] ss:$8 sps:$4 sm:$0xff]   ;;  %v1990_v19 = vld [vmem:[%s2277_s24 + $0x44] ss:$8 sps:$4 sm:$0xff]  }
  0x1d   : > { %731 = vmatpush1.bf16.msra.mxu1 %v1975_v8  ;;  %v1994_v20 = vld [vmem:[%s2306_s23 + $0x4] ss:$8 sps:$4 sm:$0xff]   ;;  %v1992_v21 = vld [vmem:[%s2306_s23] ss:$8 sps:$4 sm:$0xff]   ;;  %v1997_v24 = vld [vmem:[%s2277_s24 + $0x54] ss:$8 sps:$4 sm:$0xff]  }
  0x1e   : > { %774 = vmatpush1.bf16.msra.mxu0 %v1976_v9  ;;  %732 = vmatprep.subr.bf16.mxu1 %v1977_v10  ;;  %v1995_v22 = vld [vmem:[%s2277_s24 + $0x40] ss:$8 sps:$4 sm:$0xff]   ;;  %v2001_v25 = vld [vmem:[%s2306_s23 + $0x14] ss:$8 sps:$4 sm:$0xff]   ;;  %v1999_v27 = vld [vmem:[%s2306_s23 + $0x10] ss:$8 sps:$4 sm:$0xff]  }
  0x1f   : > { %1055 = vmatprep.subr.bf16.mxu0 %v1981_v12  ;;  %v2002_v28 = vld [vmem:[%s2277_s24 + $0x50] ss:$8 sps:$4 sm:$0xff]   ;;  %v2003_v29 = vld [vmem:[%s2277_s24 + $0x64] ss:$8 sps:$4 sm:$0xff]   ;;  %v2005_v31 = vld [vmem:[%s2306_s23 + $0x20] ss:$8 sps:$4 sm:$0xff]  }
  0x20   : > { %v2007_v30 = vld [vmem:[%s2306_s23 + $0x24] ss:$8 sps:$4 sm:$0xff]   ;;  %v2008_v32 = vld [vmem:[%s2277_s24 + $0x60] ss:$8 sps:$4 sm:$0xff]   ;;  %v2009_v33 = vld [vmem:[%s2277_s24 + $0x74] ss:$8 sps:$4 sm:$0xff]  }
  0x21   : > { %1801 = vmatmul.mubr.msk.bf16.vlgmr.msra.gmra.mrb[0].mxu0 %vm724_vm0, %v1983_v13  ;;  %733 = vmatpush1.bf16.msra.mxu1 %v1982_v14  ;;  %v2013_v34 = vld [vmem:[%s2306_s23 + $0x34] ss:$8 sps:$4 sm:$0xff]   ;;  %v2011_v35 = vld [vmem:[%s2306_s23 + $0x30] ss:$8 sps:$4 sm:$0xff]   ;;  %v2336_v37 = vld [vmem:[%s2277_s24 + $0x84] ss:$8 sps:$4 sm:$0xff]  }
  0x22   : > { %1056 = vmatpush1.bf16.msra.mxu0 %v1979_v11  ;;  %734 = vmatprep.subr.bf16.mxu1 %v1984_v15  ;;  %v2014_v36 = vld [vmem:[%s2277_s24 + $0x70] ss:$8 sps:$4 sm:$0xff]   ;;  %v2019_v38 = vld [vmem:[%s2306_s23 + $0x44] ss:$8 sps:$4 sm:$0xff]   ;;  %v2017_v39 = vld [vmem:[%s2306_s23 + $0x40] ss:$8 sps:$4 sm:$0xff]  }
  0x23   : > { %1057 = vmatprep.subr.bf16.mxu0 %v1988_v16  ;;  %1087 = vmatprep.mubr.bf16.mxu0 %v2180_v0  ;;  %v2341_v40 = vld [vmem:[%s2277_s24 + $0x80] ss:$8 sps:$4 sm:$0xff]   ;;  %v2344_v41 = vld [vmem:[%s2277_s24 + $0x94] ss:$8 sps:$4 sm:$0xff]   ;;  %v2023_v43 = vld [vmem:[%s2306_s23 + $0x50] ss:$8 sps:$4 sm:$0xff]  }
  0x24   : > { %v2025_v42 = vld [vmem:[%s2306_s23 + $0x54] ss:$8 sps:$4 sm:$0xff]   ;;  %v2351_v44 = vld [vmem:[%s2277_s24 + $0x90] ss:$8 sps:$4 sm:$0xff]   ;;  %v2027_v45 = vld [vmem:[%s2277_s24 + $0xa4] ss:$8 sps:$4 sm:$0xff]  }
  0x25   : > { %735 = vmatpush1.bf16.msra.mxu1 %v1989_v18  ;;  %v2031_v46 = vld [vmem:[%s2306_s23 + $0x64] ss:$8 sps:$4 sm:$0xff]   ;;  %v2029_v47 = vld [vmem:[%s2306_s23 + $0x60] ss:$8 sps:$4 sm:$0xff]   ;;  %v2033_v49 = vld [vmem:[%s2277_s24 + $0xb4] ss:$8 sps:$4 sm:$0xff]  }
  0x26   : > { %1058 = vmatpush1.bf16.msra.mxu0 %v1986_v17  ;;  %736 = vmatprep.subr.bf16.mxu1 %v1990_v19  ;;  %v2032_v48 = vld [vmem:[%s2277_s24 + $0xa0] ss:$8 sps:$4 sm:$0xff]   ;;  %v2037_v50 = vld [vmem:[%s2306_s23 + $0x74] ss:$8 sps:$4 sm:$0xff]   ;;  %v2035_v51 = vld [vmem:[%s2306_s23 + $0x70] ss:$8 sps:$4 sm:$0xff]  }
  0x27   : > { %1337 = vmatprep.subr.bf16.mxu0 %v1994_v20  ;;  %v2038_v52 = vld [vmem:[%s2277_s24 + $0xb0] ss:$8 sps:$4 sm:$0xff]   ;;  %v2039_v53 = vld [vmem:[%s2277_s24 + $0xc4] ss:$8 sps:$4 sm:$0xff]   ;;  %v2041_v55 = vld [vmem:[%s2306_s23 + $0x80] ss:$8 sps:$4 sm:$0xff]  }
  0x28   : > { %v2043_v54 = vld [vmem:[%s2306_s23 + $0x84] ss:$8 sps:$4 sm:$0xff]   ;;  %v2044_v56 = vld [vmem:[%s2277_s24 + $0xc0] ss:$8 sps:$4 sm:$0xff]   ;;  %v2045_v57 = vld [vmem:[%s2277_s24 + $0xd4] ss:$8 sps:$4 sm:$0xff]  }
  0x29   : > { %1841 = vmatmul.mubr.msk.bf16.vlgmr.msra.gmra.mrb[4].mxu0 %vm724_vm0, %v1996_v23  ;;  %737 = vmatpush1.bf16.msra.mxu1 %v1995_v22  ;;  %v2049_v58 = vld [vmem:[%s2306_s23 + $0x94] ss:$8 sps:$4 sm:$0xff]   ;;  %v2047_v59 = vld [vmem:[%s2306_s23 + $0x90] ss:$8 sps:$4 sm:$0xff]   ;;  %v2051_v61 = vld [vmem:[%s2277_s24 + $0xe4] ss:$8 sps:$4 sm:$0xff]  }
  0x2a   : > { %1338 = vmatpush1.bf16.msra.mxu0 %v1992_v21  ;;  %738 = vmatprep.subr.bf16.mxu1 %v1997_v24  ;;  %v2050_v60 = vld [vmem:[%s2277_s24 + $0xd0] ss:$8 sps:$4 sm:$0xff]   ;;  %v2055_v62 = vld [vmem:[%s2306_s23 + $0xa4] ss:$8 sps:$4 sm:$0xff]   ;;  %v2053_v63 = vld [vmem:[%s2306_s23 + $0xa0] ss:$8 sps:$4 sm:$0xff]  }
  0x2b   : > { %1339 = vmatprep.subr.bf16.mxu0 %v2001_v25  ;;  %1369 = vmatprep.mubr.bf16.mxu0 %v2092_v26  ;;  %v2056_v1 = vld [vmem:[%s2277_s24 + $0xe0] ss:$8 sps:$4 sm:$0xff]   ;;  %v2057_v2 = vld [vmem:[%s2277_s24 + $0xf4] ss:$8 sps:$4 sm:$0xff]   ;;  %v2059_v4 = vld [vmem:[%s2306_s23 + $0xb0] ss:$8 sps:$4 sm:$0xff]  }
  0x2c   : > { %v2061_v3 = vld [vmem:[%s2306_s23 + $0xb4] ss:$8 sps:$4 sm:$0xff]   ;;  %v2062_v5 = vld [vmem:[%s2277_s24 + $0xf0] ss:$8 sps:$4 sm:$0xff]   ;;  %v2068_v6 = vld [vmem:[%s2290_s15 + $0x4] ss:$8 sps:$4 sm:$0xff]  }
  0x2d   : > { %739 = vmatpush1.bf16.msra.mxu1 %v2002_v28  ;;  %v2071_v7 = vld [vmem:[%s2306_s23 + $0xc4] ss:$8 sps:$4 sm:$0xff]   ;;  %v2066_v9 = vld [vmem:[%s2290_s15] ss:$8 sps:$4 sm:$0xff]   ;;  %v2074_v11 = vld [vmem:[%s2290_s15 + $0x14] ss:$8 sps:$4 sm:$0xff]  }
  0x2e   : > { %1340 = vmatpush1.bf16.msra.mxu0 %v1999_v27  ;;  %740 = vmatprep.subr.bf16.mxu1 %v2003_v29  ;;  %v2063_v8 = vld [vmem:[%s2492_s3 + $0x18] ss:$12 sps:$4 sm:$0xff]   ;;  %v2069_v10 = vld [vmem:[%s2306_s23 + $0xc0] ss:$8 sps:$4 sm:$0xff]   ;;  %v2077_v12 = vld [vmem:[%s2306_s23 + $0xd4] ss:$8 sps:$4 sm:$0xff]  }
  0x2f   : > { %1341 = vmatprep.subr.bf16.mxu0 %v2007_v30  ;;  %v2072_v13 = vld [vmem:[%s2290_s15 + $0x10] ss:$8 sps:$4 sm:$0xff]   ;;  %v2080_v15 = vld [vmem:[%s2290_s15 + $0x24] ss:$8 sps:$4 sm:$0xff]   ;;  %v2078_v17 = vld [vmem:[%s2290_s15 + $0x20] ss:$8 sps:$4 sm:$0xff]  }
  0x30   : > { %v2075_v14 = vld [vmem:[%s2306_s23 + $0xd0] ss:$8 sps:$4 sm:$0xff]   ;;  %v2083_v16 = vld [vmem:[%s2306_s23 + $0xe4] ss:$8 sps:$4 sm:$0xff]   ;;  %v2081_v18 = vld [vmem:[%s2306_s23 + $0xe0] ss:$8 sps:$4 sm:$0xff]  }
  0x31   : > { %741 = vmatpush1.bf16.msra.mxu1 %v2008_v32  ;;  %v2086_v19 = vld [vmem:[%s2290_s15 + $0x34] ss:$8 sps:$4 sm:$0xff]   ;;  %v2138_v20 = vld [vmem:[%s2492_s3 + $0x4] ss:$12 sps:$4 sm:$0xff]   ;;  %v1428_v24 = vld [vmem:[%s2493_s4 + $0x8] sm:$0xff]  ;;  %s2515_s27 = smov (!%p431_p9, %s2162_s27), 15 }
  0x32   : > { %1342 = vmatpush1.bf16.msra.mxu0 %v2005_v31  ;;  %742 = vmatprep.subr.bf16.mxu1 %v2009_v33  ;;  %v2089_v21 = vld [vmem:[%s2306_s23 + $0xf4] ss:$8 sps:$4 sm:$0xff]   ;;  %v1427_v22 = vld [vmem:[%s2493_s4] sm:$0xff]  ;;  %v2084_v25 = vld [vmem:[%s2290_s15 + $0x30] ss:$8 sps:$4 sm:$0xff]   ;;  %s1753_s21 = sshll.u32 %s2509_s28, 6 }
  0x33   : > { %1343 = vmatprep.subr.bf16.mxu0 %v2013_v34  ;;  %v1467_v23 = vld [vmem:[%s2495_s6] sm:$0xff]  ;;  %1431 = vperm.xlu0 %1963, %v1427_v22   ;;  %v2087_v26 = vld [vmem:[%s2306_s23 + $0xf0] ss:$8 sps:$4 sm:$0xff]   ;;  %v1468_v27 = vld [vmem:[%s2495_s6 + $0x8] sm:$0xff] }
  0x34   : > { %1471 = vperm.xlu1 %1964, %v1467_v23   ;;  %v2095_v28 = vld [vmem:[%s2290_s15 + $0x44] ss:$8 sps:$4 sm:$0xff]   ;;  %v2090_v30 = vld [vmem:[%s2492_s3 + $0x30] ss:$12 sps:$4 sm:$0xff]   ;;  %v2093_v31 = vld [vmem:[%s2290_s15 + $0x40] ss:$8 sps:$4 sm:$0xff]  }
  0x35   : > { %743 = vmatpush1.bf16.msra.mxu1 %v2014_v36  ;;  %v2101_v29 = vld [vmem:[%s2306_s23 + $0x104] ss:$8 sps:$4 sm:$0xff]   ;;  %v2099_v32 = vld [vmem:[%s2306_s23 + $0x100] ss:$8 sps:$4 sm:$0xff]   ;;  %v2098_v33 = vld [vmem:[%s2290_s15 + $0x54] ss:$8 sps:$4 sm:$0xff]  }
  0x36   : > { %1344 = vmatpush1.bf16.msra.mxu0 %v2011_v35  ;;  %744 = vmatprep.subr.bf16.mxu1 %v2336_v37  ;;  %v2107_v34 = vld [vmem:[%s2306_s23 + $0x114] ss:$8 sps:$4 sm:$0xff]   ;;  %v2096_v35 = vld [vmem:[%s2290_s15 + $0x50] ss:$8 sps:$4 sm:$0xff]  }
  0x37   : > { %1345 = vmatprep.subr.bf16.mxu0 %v2019_v38  ;;  %1436 = vperm.xlu0 %1963, %v1428_v24   ;;  %v2105_v36 = vld [vmem:[%s2306_s23 + $0x110] ss:$8 sps:$4 sm:$0xff]   ;;  %v2104_v38 = vld [vmem:[%s2290_s15 + $0x64] ss:$8 sps:$4 sm:$0xff]  }
  0x38   : > { %1476 = vperm.xlu1 %1964, %v1468_v27  }
  0x39   : > { %745 = vmatpush1.bf16.msra.mxu1 %v2341_v40 }
  0x3a   : > { %1346 = vmatpush1.bf16.msra.mxu0 %v2017_v39  ;;  %746 = vmatprep.subr.bf16.mxu1 %v2344_v41  ;;  %v2102_v39 = vld [vmem:[%s2290_s15 + $0x60] ss:$8 sps:$4 sm:$0xff]  }
  0x3b   : > { %1347 = vmatprep.subr.bf16.mxu0 %v2025_v42  ;;  %v2110_v42 = vld [vmem:[%s2290_s15 + $0x74] ss:$8 sps:$4 sm:$0xff]  }
  0x3d   : > { %747 = vmatpush1.bf16.msra.mxu1 %v2351_v44 }
  0x3e   : > { %1348 = vmatpush1.bf16.msra.mxu0 %v2023_v43  ;;  %748 = vmatprep.subr.bf16.mxu1 %v2027_v45  ;;  %v2111_v43 = vld [vmem:[%s2492_s3 + $0x38] ss:$12 sps:$4 sm:$0xff]  }
  0x3f   : > { %1349 = vmatprep.subr.bf16.mxu0 %v2031_v46  ;;  %v2108_v45 = vld [vmem:[%s2290_s15 + $0x70] ss:$8 sps:$4 sm:$0xff]   ;;  %v2114_v46 = vld [vmem:[%s2290_s15 + $0x84] ss:$8 sps:$4 sm:$0xff]  }
  0x41   : > { %749 = vmatpush1.bf16.msra.mxu1 %v2032_v48  ;;  %v2139_v48 = vld [vmem:[%s2494_s5] sm:$0xff]  }
  0x42   : > { %1350 = vmatpush1.bf16.msra.mxu0 %v2029_v47  ;;  %750 = vmatprep.subr.bf16.mxu1 %v2033_v49  ;;  %v2112_v47 = vld [vmem:[%s2290_s15 + $0x80] ss:$8 sps:$4 sm:$0xff]   ;;  %v2115_v49 = vld [vmem:[%s2290_s15 + $0x90] ss:$8 sps:$4 sm:$0xff]  }
  0x43   : > { %1351 = vmatprep.subr.bf16.mxu0 %v2037_v50  ;;  %v2121_v50 = vld [vmem:[%s2290_s15 + $0xb0] ss:$8 sps:$4 sm:$0xff]  }
  0x45   : > { %751 = vmatpush1.bf16.msra.mxu1 %v2038_v52  ;;  %v2124_v52 = vld [vmem:[%s2290_s15 + $0xc0] ss:$8 sps:$4 sm:$0xff]  }
  0x46   : > { %1352 = vmatpush1.bf16.msra.mxu0 %v2035_v51  ;;  %752 = vmatprep.subr.bf16.mxu1 %v2039_v53  ;;  %v2126_v51 = vld [vmem:[%s2290_s15 + $0xc4] ss:$8 sps:$4 sm:$0xff]   ;;  %v2127_v53 = vld [vmem:[%s2290_s15 + $0xd0] ss:$8 sps:$4 sm:$0xff]  }
  0x47   : > { %1353 = vmatprep.subr.bf16.mxu0 %v2043_v54  ;;  %v2132_v54 = vld [vmem:[%s2290_s15 + $0xe4] ss:$8 sps:$4 sm:$0xff]  }
  0x49   : > { %753 = vmatpush1.bf16.msra.mxu1 %v2044_v56  ;;  %v2135_v56 = vld [vmem:[%s2290_s15 + $0xf4] ss:$8 sps:$4 sm:$0xff]  }
  0x4a   : > { %1354 = vmatpush1.bf16.msra.mxu0 %v2041_v55  ;;  %754 = vmatprep.subr.bf16.mxu1 %v2045_v57  ;;  %v2130_v55 = vld [vmem:[%s2290_s15 + $0xe0] ss:$8 sps:$4 sm:$0xff]   ;;  %v2133_v57 = vld [vmem:[%s2290_s15 + $0xf0] ss:$8 sps:$4 sm:$0xff]  }
  0x4b   : > { %1355 = vmatprep.subr.bf16.mxu0 %v2049_v58  ;;  %v2136_v58 = vld [vmem:[%s2492_s3] ss:$12 sps:$4 sm:$0xff]  }
  0x4d   : > { %755 = vmatpush1.bf16.msra.mxu1 %v2050_v60 }
  0x4e   : > { %1356 = vmatpush1.bf16.msra.mxu0 %v2047_v59  ;;  %756 = vmatprep.subr.bf16.mxu1 %v2051_v61 }
  0x4f   : > { %1357 = vmatprep.subr.bf16.mxu0 %v2055_v62 }
  0x51   : > { %757 = vmatpush1.bf16.msra.mxu1 %v2056_v1 }
  0x52   : > { %1358 = vmatpush1.bf16.msra.mxu0 %v2053_v63  ;;  %758 = vmatprep.subr.bf16.mxu1 %v2057_v2 }
  0x53   : > { %1359 = vmatprep.subr.bf16.mxu0 %v2061_v3 }
  0x55   : > { %759 = vmatpush1.bf16.msra.mxu1 %v2062_v5 }
  0x56   : > { %1360 = vmatpush1.bf16.msra.mxu0 %v2059_v4  ;;  %1012 = vmatprep.subr.bf16.mxu1 %v2068_v6 }
  0x57   : > { %1361 = vmatprep.subr.bf16.mxu0 %v2071_v7 }
  0x58   : > { %761 = vmatmul.mubr.bf16.vlgmr.msra.gmra.mrb[0].mxu1 %v2063_v8 }
  0x59   : > { %1013 = vmatpush1.bf16.msra.mxu1 %v2066_v9  ;;  %1044 = vmatprep.mubr.bf16.mxu1 %v2138_v20 }
  0x5a   : > { %1362 = vmatpush1.bf16.msra.mxu0 %v2069_v10  ;;  %1014 = vmatprep.subr.bf16.mxu1 %v2074_v11 }
  0x5b   : > { %1363 = vmatprep.subr.bf16.mxu0 %v2077_v12 }
  0x5d   : > { %1015 = vmatpush1.bf16.msra.mxu1 %v2072_v13 }
  0x5e   : > { %1364 = vmatpush1.bf16.msra.mxu0 %v2075_v14  ;;  %1016 = vmatprep.subr.bf16.mxu1 %v2080_v15 }
  0x5f   : > { %1365 = vmatprep.subr.bf16.mxu0 %v2083_v16 }
  0x61   : > { %1017 = vmatpush1.bf16.msra.mxu1 %v2078_v17 }
  0x62   : > { %1366 = vmatpush1.bf16.msra.mxu0 %v2081_v18  ;;  %1018 = vmatprep.subr.bf16.mxu1 %v2086_v19 }
  0x63   : > { %1367 = vmatprep.subr.bf16.mxu0 %v2089_v21 }
  0x65   : > { %1019 = vmatpush1.bf16.msra.mxu1 %v2084_v25 }
  0x66   : > { %1368 = vmatpush1.bf16.msra.mxu0 %v2087_v26  ;;  %1020 = vmatprep.subr.bf16.mxu1 %v2095_v28 }
  0x67   : > { %1380 = vmatprep.subr.bf16.mxu0 %v2101_v29 }
  0x69   : > { %1370 = vmatmul.mubr.bf16.vlgmr.msra.gmra.mrb[4].mxu0 %v2090_v30  ;;  %1021 = vmatpush1.bf16.msra.mxu1 %v2093_v31 }
  0x6a   : > { %1381 = vmatpush1.bf16.msra.mxu0 %v2099_v32  ;;  %1022 = vmatprep.subr.bf16.mxu1 %v2098_v33 }
  0x6b   : > { %1382 = vmatprep.subr.bf16.mxu0 %v2107_v34  ;;  %1412 = vmatprep.mubr.bf16.mxu0 %v2180_v0 }
  0x6d   : > { %1023 = vmatpush1.bf16.msra.mxu1 %v2096_v35 }
  0x6e   : > { %1383 = vmatpush1.bf16.msra.mxu0 %v2105_v36  ;;  %1024 = vmatprep.subr.bf16.mxu1 %v2104_v38 }
  0x6f   : > { %1507 = vmatprep.subr.bf16.mxu0 %v2336_v37  ;;  %v2117_v37 = vld [vmem:[%s2290_s15 + $0x94] ss:$8 sps:$4 sm:$0xff]  }
  0x71   : > { %1025 = vmatpush1.bf16.msra.mxu1 %v2102_v39 }
  0x72   : > { %1026 = vmatprep.subr.bf16.mxu1 %v2110_v42 }
  0x75   : > { %1885 = vmatmul.mubr.msk.bf16.vlgmr.msra.gmra.mrb[4].mxu0 %vm724_vm0, %v2111_v43  ;;  %1027 = vmatpush1.bf16.msra.mxu1 %v2108_v45 }
  0x76   : > { %1508 = vmatpush1.bf16.msra.mxu0 %v2341_v40  ;;  %1028 = vmatprep.subr.bf16.mxu1 %v2114_v46  ;;  %v2120_v40 = vld [vmem:[%s2290_s15 + $0xa4] ss:$8 sps:$4 sm:$0xff]  }
  0x77   : > { %1509 = vmatprep.subr.bf16.mxu0 %v2344_v41  ;;  %1539 = vmatprep.mubr.bf16.mxu0 %v2180_v0  ;;  %v2118_v41 = vld [vmem:[%s2290_s15 + $0xa0] ss:$8 sps:$4 sm:$0xff]   ;;  %v2123_v0 = vld [vmem:[%s2290_s15 + $0xb4] ss:$8 sps:$4 sm:$0xff]  }
  0x79   : > { %1029 = vmatpush1.bf16.msra.mxu1 %v2112_v47 }
  0x7a   : > { %1510 = vmatpush1.bf16.msra.mxu0 %v2351_v44  ;;  %1030 = vmatprep.subr.bf16.mxu1 %v2117_v37  ;;  %v2129_v44 = vld [vmem:[%s2290_s15 + $0xd4] ss:$8 sps:$4 sm:$0xff]   ;;  %s1752_s15 = sshll.u32 %s2515_s27, 2 }
  0x7b   : > { %s2464_s17 = sadd.s32 %s1753_s21, %s1752_s15 }
  0x7c   : > { %s1757_s22 = sshll.u32 %s2464_s17, 3  ;;  %s1754_s27 = sshll.u32 %s2464_s17, 2 }
  0x7d   : > { %1893 = vmatmul.mubr.msk.bf16.vlgmr.msra.gmra.mrb[8].mxu0 %vm724_vm0, %v2139_v48  ;;  %1031 = vmatpush1.bf16.msra.mxu1 %v2115_v49  ;;  %s446_s26 = scalar_lea.vmem %s2497_s8, %s1757_s22  ;;  %s437_s14 = scalar_lea.vmem %s2496_s7, %s1754_s27 }
  0x7e   : > { %1032 = vmatprep.subr.bf16.mxu1 %v2120_v40 }
  0x81   : > { %1033 = vmatpush1.bf16.msra.mxu1 %v2118_v41 }
  0x82   : > { %1034 = vmatprep.subr.bf16.mxu1 %v2123_v0 }
  0x85   : > { %1035 = vmatpush1.bf16.msra.mxu1 %v2121_v50 }
  0x86   : > { %1036 = vmatprep.subr.bf16.mxu1 %v2126_v51 }
  0x89   : > { %1037 = vmatpush1.bf16.msra.mxu1 %v2124_v52 }
  0x8a   : > { %1038 = vmatprep.subr.bf16.mxu1 %v2129_v44 }
  0x8d   : > { %1039 = vmatpush1.bf16.msra.mxu1 %v2127_v53 }
  0x8e   : > { %1040 = vmatprep.subr.bf16.mxu1 %v2132_v54 }
  0x91   : > { %1041 = vmatpush1.bf16.msra.mxu1 %v2130_v55 }
  0x92   : > { %1042 = vmatprep.subr.bf16.mxu1 %v2135_v56 }
  0x95   : > { %1043 = vmatpush1.bf16.msra.mxu1 %v2133_v57 }
  0x98   : > { %1045 = vmatmul.mubr.bf16.vlgmr.msra.gmra.mrb[4].mxu1 %v2136_v58 }
  0xb2   : > { %v1432_v22 = vpop.permute.xlu0 %1431 }
  0xb3   : > { %v1472_v11 = vpop.permute.xlu1 %1471 }
  0xb6   : > { %v1437_v36 = vpop.permute.xlu0 %1436 }
  0xb7   : > { %v1477_v14 = vpop.permute.xlu1 %1476 }
  0xf4   : > { %v805_v59 = vpop.f32.mrb[0].mxu0 }
  0xf5   : > { %v807_v60 = vpop.f32.mrb[1].mxu0 }
  0xf6   : > { %v809_v61 = vpop.f32.mrb[2].mxu0 }
  0xf7   : > { %v811_v62 = vpop.f32.mrb[3].mxu0 }
 0x12b   : > { %v762_v63 = vpop.f32.mrb[0].mxu1 }
 0x12c   : > { %v806_v1 = vadd.f32 %v805_v59, %v762_v63  ;;  %v764_v2 = vpop.f32.mrb[1].mxu1 }
 0x12d   : > { %v808_v3 = vadd.f32 %v807_v60, %v764_v2  ;;  %v766_v4 = vpop.f32.mrb[2].mxu1 }
 0x12e   : > { %v810_v5 = vadd.f32 %v809_v61, %v766_v4  ;;  %v768_v6 = vpop.f32.mrb[3].mxu1 }
 0x12f   : > { %v812_v7 = vadd.f32 %v811_v62, %v768_v6 }
 0x148   : > { %v1414_v8 = vpop.f32.mrb[4].mxu0 }
 0x149   : > { %v1416_v9 = vpop.f32.mrb[5].mxu0 }
 0x14a   : > { %v1418_v10 = vpop.f32.mrb[6].mxu0 }
 0x14b   : > { %v1420_v12 = vpop.f32.mrb[7].mxu0 }
 0x150   : > { %v1541_v13 = vpop.f32.mrb[8].mxu0 }
 0x151   : > { %v1542_v15 = vadd.f32 %v1541_v13, %v1472_v11  ;;  %v1543_v16 = vpop.f32.mrb[9].mxu0 }
 0x152   : > { %v1544_v17 = vadd.f32 %v1543_v16, %v1472_v11  ;;  %v1545_v18 = vpop.f32.mrb[10].mxu0 }
 0x153   : > { %1550 = vst [vmem:[%s446_s26] sm:$0xff] %v1542_v15  ;;  %v1546_v19 = vadd.f32 %v1545_v18, %v1477_v14  ;;  %v1547_v20 = vpop.f32.mrb[11].mxu0 }
 0x154   : > { %1551 = vst [vmem:[%s446_s26 + $0x8] sm:$0xff] %v1544_v17  ;;  %v1548_v21 = vadd.f32 %v1547_v20, %v1477_v14 }
 0x155   : > { %1552 = vst [vmem:[%s446_s26 + $0x10] sm:$0xff] %v1546_v19 }
 0x156   : > { %1553 = vst [vmem:[%s446_s26 + $0x18] sm:$0xff] %v1548_v21 }
 0x16b   : > { %v1046_v23 = vpop.f32.mrb[4].mxu1 }
 0x16c   : > { %v1047_v24 = vadd.f32 %v1046_v23, %v806_v1  ;;  %v1048_v25 = vpop.f32.mrb[5].mxu1 }
 0x16d   : > { %v1049_v26 = vadd.f32 %v1048_v25, %v808_v3  ;;  %v1050_v27 = vpop.f32.mrb[6].mxu1 }
 0x16e   : > { %v1900_v28 = vadd.f32 %v1414_v8, %v1047_v24  ;;  %v1051_v29 = vadd.f32 %v1050_v27, %v810_v5  ;;  %v1052_v30 = vpop.f32.mrb[7].mxu1 }
 0x16f   : > { %v1903_v31 = vadd.f32 %v1416_v9, %v1049_v26  ;;  %v1053_v32 = vadd.f32 %v1052_v30, %v812_v7 }
 0x170   : > { %v1439_v33 = vadd.f32 %v1900_v28, %v1432_v22  ;;  %v1906_v34 = vadd.f32 %v1418_v10, %v1051_v29 }
 0x171   : > { %v1440_v35 = vadd.f32 %v1903_v31, %v1432_v22  ;;  %v1909_v38 = vadd.f32 %v1420_v12, %v1053_v32 }
 0x172   : > { %v1443_v39 = vmax.f32 %v1439_v33, 0.0  ;;  %v1441_v42 = vadd.f32 %v1906_v34, %v1437_v36 }
 0x173   : > { %v1444_v43 = vmax.f32 %v1440_v35, 0.0  ;;  %v1442_v45 = vadd.f32 %v1909_v38, %v1437_v36 }
 0x174   : > { %v1445_v46 = vmax.f32 %v1441_v42, 0.0 }
 0x175   : > { %v1896_v47 = vpack.c.bf16 %v1444_v43, %v1443_v39  ;;  %v1446_v37 = vmax.f32 %v1442_v45, 0.0 }
 0x177   : > { %v1897_v48 = vpack.c.bf16 %v1446_v37, %v1445_v46  ;;  %1459 = vst [vmem:[%s437_s14] sm:$0xff] %v1896_v47 }
 0x179   : > { %1460 = vst [vmem:[%s437_s14 + $0x8] sm:$0xff] %v1897_v48 }
 0x17a PF: > { %s19_s9 = sadd.s32 1, %s2178_s9   ;;  %s2498_s27 = smov %s2170_s29 }
 0x17b   : > { %p16_p10 = scmp.ge.s32.totalorder %s19_s9, 34   ;;  %s2499_s28 = smov %s2174_s30 }
 0x17c   : > { %s2500_s29 = smov %s2503_s10  ;;  %s2501_s30 = smov %s2507_s11 }
 0x17d   :  { %18 = sbr.rel (!%p16_p10) target bundleno = 3 (0x3), region = 98 }

// kernel: focal_conv_up_block_forward.5
= control target key start
LH: loop header
LB: loop body
LE: loop exit
PB: predicated region body
PF: predicated region fallthrough
CT: control target
= control target key end

     0   :  { %s1400_s21 = smov 0   ;;  %s1402_s22 = smov 0   ;;  %s1564_s0 = inlined_call_operand.vmem [shape: bf16[2,18,144,256], index: 0, kind: input, shape index: {}, may-alias: {0,1,2}]   ;;  %s1565_s1 = inlined_call_operand.vmem [shape: bf16[2,18,144,256], index: 1, kind: input, shape index: {}, may-alias: {0,1,2}]   ;;  %s1566_s2 = inlined_call_operand.vmem [shape: bf16[2,18,144,256], index: 2, kind: input, shape index: {}, may-alias: {0,1,2}]   ;;  %s1567_s3 = inlined_call_operand.vmem [shape: bf16[3,16,144], index: 3, kind: input, shape index: {}]   ;;  %s1568_s4 = inlined_call_operand.vmem [shape: f32[16,1], index: 4, kind: input, shape index: {}]   ;;  %s1569_s5 = inlined_call_operand.vmem [shape: f32[2,16,16,256], index: 5, kind: input, shape index: {}]   ;;  %s1570_s6 = inlined_call_operand.vmem [shape: f32[2,16,16,256], index: 6, kind: output, shape index: {}]  }
   0x1   :  { %s1404_s23 = smov 0   ;;  %s1406_s24 = smov 0  }
   0x2   :  { %s1408_s25 = smov 0  }
   0x3 LB: > { %s25_s26 = sadd.s32 1, %s1354_s23  ;;  %s28_s27 = sadd.s32 1, %s1358_s24  ;;  %s1362_s25 = sphi %s1408_s25, %s16_s25   ;;  %s1358_s24 = sphi %s1406_s24, %s1574_s24   ;;  %s1354_s23 = sphi %s1404_s23, %s1573_s23   ;;  %s1350_s22 = sphi %s1402_s22, %s1572_s22   ;;  %s1346_s21 = sphi %s1400_s21, %s1571_s21  }
   0x4   : > { %p26_p0 = scmp.ge.s32.totalorder %s25_s26, 16  ;;  %p1101_p1 = scmp.ge.s32.totalorder %s1362_s25, 1 }
   0x5   : > { %p288_p2 = scmp.lt.s32.totalorder %s1362_s25, 33 }
   0x6   : > { %s1576_s26 = smov (%p26_p0, %s25_s26), 0  ;;  %s1578_s27 = smov (!%p26_p0, %s28_s27), %s1358_s24 }
   0x7   : > { %p289_p3 = pnand %p1101_p1, %p288_p2  ;;  %p30_p4 = scmp.ge.s32.totalorder %s1578_s27, 2 }
   0x8   : > { %p355_p5 = scmp.lt.s32.totalorder (!%p289_p3), %s1350_s22, 1  ;;  %p357_p6 = scmp.lt.s32.totalorder (!%p289_p3), %s1346_s21, 17  ;;  %vm545_vm0 = vcmask (!%p289_p3), 130048   ;;  %v1266_v0 = vld [vmem:[%s1567_s3 + $0x4] ss:$8 sps:$4 sm:$0xff] (!%p289_p3)   ;;  %v1364_v2 = vmov (!%p289_p3), 0  }
   0x9   : > { %s1580_s27 = smov (%p30_p4, %s1578_s27), 0  ;;  %292 = sbr.rel (%p289_p3) target bundleno = 321 (0x141), region = 44 }
   0xa   : > { %s364_s28 = sadd.s32 (!%p289_p3), 1, %s1346_s21  ;;  %v1317_v1 = vld [vmem:[%s1567_s3 + $0x14] ss:$8 sps:$4 sm:$0xff] (!%p289_p3)   ;;  %1154 = vmatprep.mubr.msk.bf16.mxu0 (!%p289_p3), %vm545_vm0, %v1266_v0  ;;  %1233 = vset.pattern.permute.xlu0 (!%p289_p3), %v1364_v2  ;;  %v907_v3 = vld [vmem:[%s1568_s4] sm:$0xff] (!%p289_p3)  ;;  %s375_s14 = sadd.s32 (!%p289_p3), 2, %s1346_s21  ;;  %v908_v4 = vld [vmem:[%s1568_s4 + $0x8] sm:$0xff] (!%p289_p3) }
   0xb   : > { %p367_p7 = scmp.lt.s32.totalorder (!%p289_p3), %s364_s28, 17  ;;  %1133 = vmatprep.mubr.msk.bf16.mxu1 (!%p289_p3), %vm545_vm0, %v1317_v1  ;;  %911 = vperm.xlu0 (!%p289_p3), %1233, %v907_v3   ;;  %p378_p8 = scmp.lt.s32.totalorder (!%p289_p3), %s375_s14, 17  ;;  %v1264_v37 = vld [vmem:[%s1567_s3] ss:$8 sps:$4 sm:$0xff] (!%p289_p3)   ;;  %v1321_v42 = vld [vmem:[%s1567_s3 + $0x24] ss:$8 sps:$4 sm:$0xff] (!%p289_p3)  }
   0xc   : > { %v1315_v50 = vld [vmem:[%s1567_s3 + $0x10] ss:$8 sps:$4 sm:$0xff] (!%p289_p3)   ;;  %v1323_v62 = vld [vmem:[%s1567_s3 + $0x20] ss:$8 sps:$4 sm:$0xff] (!%p289_p3)   ;;  %p388_p9 = scmp.lt.s32.totalorder (!%p289_p3), %s1346_s21, 15 }
   0xf   : > { %916 = vperm.xlu0 (!%p289_p3), %1233, %v908_v4  }
  0x10   : > { %s1582_s22 = smov (!%p355_p5, %s1350_s22), 1  ;;  %s1584_s28 = smov (!%p367_p7, %s364_s28), 17 }
  0x11   : > { %s358_s9 = scalar_select %p357_p6, %s1346_s21, 17 }
  0x12   : > { %s1445_s10 = smul.u32 648, %s1582_s22  ;;  %s1586_s14 = smov (!%p378_p8, %s375_s14), 17 }
  0x13   : > { %s1188_s13 = smul.u32 36, %s358_s9  ;;  %s1588_s21 = smov (!%p388_p9, %s1346_s21), 15 }
  0x14   : > { %s1190_s19 = smul.u32 36, %s1584_s28 }
  0x15   : > { %s361_s17 = sadd.s32 %s1445_s10, %s1188_s13  ;;  %s1191_s7 = smul.u32 36, %s1586_s14 }
  0x16   : > { %s1102_s18 = sshll.u32 %s361_s17, 2  ;;  %s371_s28 = sadd.s32 %s1190_s19, %s1445_s10 }
  0x17   : > { %s1459_s30 = scalar_lea.vmem %s1564_s0, %s1102_s18  ;;  %s1103_s8 = sshll.u32 %s371_s28, 2 }
  0x18   : > { %v1234_v5 = vld [vmem:[%s1459_s30 + $0x4] ss:$8 sps:$4 sm:$0xff]   ;;  %v1236_v6 = vld [vmem:[%s1459_s30] ss:$8 sps:$4 sm:$0xff]   ;;  %v1237_v7 = vld [vmem:[%s1459_s30 + $0x14] ss:$8 sps:$4 sm:$0xff]   ;;  %s382_s9 = sadd.s32 %s1191_s7, %s1445_s10  ;;  %s1473_s13 = scalar_lea.vmem %s1565_s1, %s1103_s8 }
  0x19   : > { %694 = vmatprep.subr.bf16.mxu0 %v1234_v5  ;;  %v1239_v8 = vld [vmem:[%s1459_s30 + $0x10] ss:$8 sps:$4 sm:$0xff]   ;;  %v1240_v9 = vld [vmem:[%s1459_s30 + $0x24] ss:$8 sps:$4 sm:$0xff]   ;;  %v1242_v10 = vld [vmem:[%s1459_s30 + $0x20] ss:$8 sps:$4 sm:$0xff]  }
  0x1a   : > { %695 = vmatpush1.bf16.msra.mxu0 %v1236_v6  ;;  %v1243_v11 = vld [vmem:[%s1459_s30 + $0x34] ss:$8 sps:$4 sm:$0xff]   ;;  %s1104_s15 = sshll.u32 %s382_s9, 2  ;;  %v1245_v12 = vld [vmem:[%s1459_s30 + $0x30] ss:$8 sps:$4 sm:$0xff]   ;;  %s1105_s8 = sshll.u32 %s1588_s21, 2 }
  0x1b   : > { %696 = vmatprep.subr.bf16.mxu0 %v1237_v7  ;;  %v1246_v13 = vld [vmem:[%s1459_s30 + $0x44] ss:$8 sps:$4 sm:$0xff]   ;;  %s1481_s16 = scalar_lea.vmem %s1566_s2, %s1104_s15  ;;  %v1263_v15 = vld [vmem:[%s1473_s13] ss:$8 sps:$4 sm:$0xff]   ;;  %v1270_v17 = vld [vmem:[%s1473_s13 + $0x14] ss:$8 sps:$4 sm:$0xff]  }
  0x1c   : > { %v1260_v14 = vld [vmem:[%s1473_s13 + $0x4] ss:$8 sps:$4 sm:$0xff]   ;;  %v1248_v16 = vld [vmem:[%s1459_s30 + $0x40] ss:$8 sps:$4 sm:$0xff]   ;;  %v1272_v18 = vld [vmem:[%s1473_s13 + $0x10] ss:$8 sps:$4 sm:$0xff]  }
  0x1d   : > { %549 = vmatprep.subr.bf16.mxu1 %v1260_v14  ;;  %v1249_v19 = vld [vmem:[%s1459_s30 + $0x54] ss:$8 sps:$4 sm:$0xff]   ;;  %v1251_v20 = vld [vmem:[%s1459_s30 + $0x50] ss:$8 sps:$4 sm:$0xff]   ;;  %v1276_v21 = vld [vmem:[%s1473_s13 + $0x24] ss:$8 sps:$4 sm:$0xff]  }
  0x1e   : > { %697 = vmatpush1.bf16.msra.mxu0 %v1239_v8  ;;  %550 = vmatpush1.bf16.msra.mxu1 %v1263_v15  ;;  %v1252_v22 = vld [vmem:[%s1459_s30 + $0x64] ss:$8 sps:$4 sm:$0xff]   ;;  %v1278_v23 = vld [vmem:[%s1473_s13 + $0x20] ss:$8 sps:$4 sm:$0xff]   ;;  %v1282_v24 = vld [vmem:[%s1473_s13 + $0x34] ss:$8 sps:$4 sm:$0xff]  }
  0x1f   : > { %698 = vmatprep.subr.bf16.mxu0 %v1240_v9  ;;  %551 = vmatprep.subr.bf16.mxu1 %v1270_v17  ;;  %v1254_v25 = vld [vmem:[%s1459_s30 + $0x60] ss:$8 sps:$4 sm:$0xff]   ;;  %v1255_v26 = vld [vmem:[%s1459_s30 + $0x74] ss:$8 sps:$4 sm:$0xff]   ;;  %v1284_v27 = vld [vmem:[%s1473_s13 + $0x30] ss:$8 sps:$4 sm:$0xff]  }
  0x20   : > { %v1288_v28 = vld [vmem:[%s1473_s13 + $0x44] ss:$8 sps:$4 sm:$0xff]   ;;  %v1257_v29 = vld [vmem:[%s1459_s30 + $0x70] ss:$8 sps:$4 sm:$0xff]   ;;  %v1290_v31 = vld [vmem:[%s1473_s13 + $0x40] ss:$8 sps:$4 sm:$0xff]  }
  0x21   : > { %v1258_v30 = vld [vmem:[%s1459_s30 + $0x84] ss:$8 sps:$4 sm:$0xff]   ;;  %v1294_v32 = vld [vmem:[%s1473_s13 + $0x54] ss:$8 sps:$4 sm:$0xff]   ;;  %v1262_v33 = vld [vmem:[%s1459_s30 + $0x80] ss:$8 sps:$4 sm:$0xff]  }
  0x22   : > { %699 = vmatpush1.bf16.msra.mxu0 %v1242_v10  ;;  %552 = vmatpush1.bf16.msra.mxu1 %v1272_v18  ;;  %v1269_v34 = vld [vmem:[%s1481_s16 + $0x4] ss:$8 sps:$4 sm:$0xff]   ;;  %v1296_v35 = vld [vmem:[%s1473_s13 + $0x50] ss:$8 sps:$4 sm:$0xff]   ;;  %v1267_v38 = vld [vmem:[%s1481_s16] ss:$8 sps:$4 sm:$0xff]  }
  0x23   : > { %700 = vmatprep.subr.bf16.mxu0 %v1243_v11  ;;  %553 = vmatprep.subr.bf16.mxu1 %v1276_v21  ;;  %v1300_v36 = vld [vmem:[%s1473_s13 + $0x64] ss:$8 sps:$4 sm:$0xff]   ;;  %v1302_v39 = vld [vmem:[%s1473_s13 + $0x60] ss:$8 sps:$4 sm:$0xff]   ;;  %v1275_v40 = vld [vmem:[%s1481_s16 + $0x14] ss:$8 sps:$4 sm:$0xff]  }
  0x24   : > { %v1306_v41 = vld [vmem:[%s1473_s13 + $0x74] ss:$8 sps:$4 sm:$0xff]   ;;  %v1273_v43 = vld [vmem:[%s1481_s16 + $0x10] ss:$8 sps:$4 sm:$0xff]   ;;  %v1281_v45 = vld [vmem:[%s1481_s16 + $0x24] ss:$8 sps:$4 sm:$0xff]  }
  0x25   : > { %v1308_v44 = vld [vmem:[%s1473_s13 + $0x70] ss:$8 sps:$4 sm:$0xff]   ;;  %v1312_v46 = vld [vmem:[%s1473_s13 + $0x84] ss:$8 sps:$4 sm:$0xff]   ;;  %v1279_v47 = vld [vmem:[%s1481_s16 + $0x20] ss:$8 sps:$4 sm:$0xff]  }
  0x26   : > { %701 = vmatpush1.bf16.msra.mxu0 %v1245_v12  ;;  %554 = vmatpush1.bf16.msra.mxu1 %v1278_v23  ;;  %v1314_v48 = vld [vmem:[%s1473_s13 + $0x80] ss:$8 sps:$4 sm:$0xff]   ;;  %v1287_v49 = vld [vmem:[%s1481_s16 + $0x34] ss:$8 sps:$4 sm:$0xff]   ;;  %v1285_v51 = vld [vmem:[%s1481_s16 + $0x30] ss:$8 sps:$4 sm:$0xff]  }
  0x27   : > { %702 = vmatprep.subr.bf16.mxu0 %v1246_v13  ;;  %555 = vmatprep.subr.bf16.mxu1 %v1282_v24  ;;  %v1293_v52 = vld [vmem:[%s1481_s16 + $0x44] ss:$8 sps:$4 sm:$0xff]   ;;  %v1291_v53 = vld [vmem:[%s1481_s16 + $0x40] ss:$8 sps:$4 sm:$0xff]   ;;  %v1299_v54 = vld [vmem:[%s1481_s16 + $0x54] ss:$8 sps:$4 sm:$0xff]  }
  0x28   : > { %v1297_v55 = vld [vmem:[%s1481_s16 + $0x50] ss:$8 sps:$4 sm:$0xff]   ;;  %v1305_v56 = vld [vmem:[%s1481_s16 + $0x64] ss:$8 sps:$4 sm:$0xff]   ;;  %v1303_v57 = vld [vmem:[%s1481_s16 + $0x60] ss:$8 sps:$4 sm:$0xff]  }
  0x29   : > { %v1311_v58 = vld [vmem:[%s1481_s16 + $0x74] ss:$8 sps:$4 sm:$0xff]   ;;  %v1309_v59 = vld [vmem:[%s1481_s16 + $0x70] ss:$8 sps:$4 sm:$0xff]   ;;  %v1320_v60 = vld [vmem:[%s1481_s16 + $0x84] ss:$8 sps:$4 sm:$0xff]  }
  0x2a   : > { %703 = vmatpush1.bf16.msra.mxu0 %v1248_v16  ;;  %556 = vmatpush1.bf16.msra.mxu1 %v1284_v27  ;;  %v1318_v61 = vld [vmem:[%s1481_s16 + $0x80] ss:$8 sps:$4 sm:$0xff]   ;;  %s1106_s9 = sshll.u32 %s1582_s22, 6 }
  0x2b   : > { %704 = vmatprep.subr.bf16.mxu0 %v1249_v19  ;;  %557 = vmatprep.subr.bf16.mxu1 %v1288_v28  ;;  %s392_s11 = sadd.s32 %s1106_s9, %s1105_s8 }
  0x2c   : > { %s1107_s12 = sshll.u32 %s392_s11, 3 }
  0x2d   : > { %s394_s10 = scalar_lea.vmem %s1569_s5, %s1107_s12  ;;  %s403_s14 = scalar_lea.vmem %s1570_s6, %s1107_s12 }
  0x2e   : > { %705 = vmatpush1.bf16.msra.mxu0 %v1251_v20  ;;  %558 = vmatpush1.bf16.msra.mxu1 %v1290_v31  ;;  %v923_v7 = vld [vmem:[%s394_s10] sm:$0xff]  ;;  %v924_v11 = vld [vmem:[%s394_s10 + $0x8] sm:$0xff]  ;;  %v925_v16 = vld [vmem:[%s394_s10 + $0x10] sm:$0xff] }
  0x2f   : > { %706 = vmatprep.subr.bf16.mxu0 %v1252_v22  ;;  %559 = vmatprep.subr.bf16.mxu1 %v1294_v32  ;;  %v926_v20 = vld [vmem:[%s394_s10 + $0x18] sm:$0xff] }
  0x32   : > { %707 = vmatpush1.bf16.msra.mxu0 %v1254_v25  ;;  %560 = vmatpush1.bf16.msra.mxu1 %v1296_v35 }
  0x33   : > { %708 = vmatprep.subr.bf16.mxu0 %v1255_v26  ;;  %561 = vmatprep.subr.bf16.mxu1 %v1300_v36 }
  0x36   : > { %709 = vmatpush1.bf16.msra.mxu0 %v1257_v29  ;;  %562 = vmatpush1.bf16.msra.mxu1 %v1302_v39 }
  0x37   : > { %710 = vmatprep.subr.bf16.mxu0 %v1258_v30  ;;  %563 = vmatprep.subr.bf16.mxu1 %v1306_v41 }
  0x3a   : > { %711 = vmatpush1.bf16.msra.mxu0 %v1262_v33  ;;  %564 = vmatpush1.bf16.msra.mxu1 %v1308_v44 }
  0x3b   : > { %860 = vmatprep.subr.bf16.mxu0 %v1269_v34  ;;  %565 = vmatprep.subr.bf16.mxu1 %v1312_v46 }
  0x3d   : > { %727 = vmatmul.mubr.bf16.vlgmr.msra.gmra.mrb[0].mxu0 %v1264_v37 }
  0x3e   : > { %861 = vmatpush1.bf16.msra.mxu0 %v1267_v38  ;;  %1177 = vmatprep.mubr.msk.bf16.mxu0 %vm545_vm0, %v1321_v42 }
  0x3f   : > { %862 = vmatprep.subr.bf16.mxu0 %v1275_v40  ;;  %566 = vmatpush1.bf16.msra.mxu1 %v1314_v48 }
  0x42   : > { %863 = vmatpush1.bf16.msra.mxu0 %v1273_v43  ;;  %582 = vmatmul.mubr.bf16.vlgmr.msra.gmra.mrb[0].mxu1 %v1315_v50 }
  0x43   : > { %864 = vmatprep.subr.bf16.mxu0 %v1281_v45 }
  0x46   : > { %865 = vmatpush1.bf16.msra.mxu0 %v1279_v47 }
  0x47   : > { %866 = vmatprep.subr.bf16.mxu0 %v1287_v49 }
  0x4a   : > { %867 = vmatpush1.bf16.msra.mxu0 %v1285_v51 }
  0x4b   : > { %868 = vmatprep.subr.bf16.mxu0 %v1293_v52 }
  0x4e   : > { %869 = vmatpush1.bf16.msra.mxu0 %v1291_v53 }
  0x4f   : > { %870 = vmatprep.subr.bf16.mxu0 %v1299_v54 }
  0x52   : > { %871 = vmatpush1.bf16.msra.mxu0 %v1297_v55 }
  0x53   : > { %872 = vmatprep.subr.bf16.mxu0 %v1305_v56 }
  0x56   : > { %873 = vmatpush1.bf16.msra.mxu0 %v1303_v57 }
  0x57   : > { %874 = vmatprep.subr.bf16.mxu0 %v1311_v58 }
  0x5a   : > { %875 = vmatpush1.bf16.msra.mxu0 %v1309_v59 }
  0x5b   : > { %876 = vmatprep.subr.bf16.mxu0 %v1320_v60 }
  0x5e   : > { %877 = vmatpush1.bf16.msra.mxu0 %v1318_v61 }
  0x61   : > { %893 = vmatmul.mubr.bf16.vlgmr.msra.gmra.mrb[0].mxu0 %v1323_v62 }
  0x8a   : > { %v912_v3 = vpop.permute.xlu0 %911 }
  0x8e   : > { %v917_v14 = vpop.permute.xlu0 %916 }
 0x115   : > { %v583_v63 = vpop.f32.mrb[0].mxu1 }
 0x116   : > { %v585_v0 = vpop.f32.mrb[1].mxu1 }
 0x117   : > { %v587_v1 = vpop.f32.mrb[2].mxu1 }
 0x118   : > { %v589_v2 = vpop.f32.mrb[3].mxu1 }
 0x134   : > { %v894_v4 = vpop.f32.mrb[0].mxu0 }
 0x135   : > { %v1180_v5 = vadd.f32 %v894_v4, %v583_v63  ;;  %v896_v6 = vpop.f32.mrb[1].mxu0 }
 0x136   : > { %v1181_v8 = vadd.f32 %v896_v6, %v585_v0  ;;  %v898_v9 = vpop.f32.mrb[2].mxu0 }
 0x137   : > { %v919_v10 = vadd.f32 %v1180_v5, %v912_v3  ;;  %v1182_v12 = vadd.f32 %v898_v9, %v587_v1  ;;  %v900_v13 = vpop.f32.mrb[3].mxu0 }
 0x138   : > { %v920_v15 = vadd.f32 %v1181_v8, %v912_v3  ;;  %v1183_v17 = vadd.f32 %v900_v13, %v589_v2 }
 0x139   : > { %v927_v18 = vadd.f32 %v923_v7, %v919_v10  ;;  %v921_v19 = vadd.f32 %v1182_v12, %v917_v14 }
 0x13a   : > { %v928_v21 = vadd.f32 %v924_v11, %v920_v15  ;;  %v922_v22 = vadd.f32 %v1183_v17, %v917_v14 }
 0x13b   : > { %v931_v23 = vmax.f32 %v927_v18, 0.0  ;;  %v929_v24 = vadd.f32 %v925_v16, %v921_v19 }
 0x13c   : > { %v932_v25 = vmax.f32 %v928_v21, 0.0  ;;  %v930_v26 = vadd.f32 %v926_v20, %v922_v22 }
 0x13d   : > { %935 = vst [vmem:[%s403_s14] sm:$0xff] %v931_v23  ;;  %v933_v27 = vmax.f32 %v929_v24, 0.0 }
 0x13e   : > { %936 = vst [vmem:[%s403_s14 + $0x8] sm:$0xff] %v932_v25  ;;  %v934_v28 = vmax.f32 %v930_v26, 0.0 }
 0x13f   : > { %937 = vst [vmem:[%s403_s14 + $0x10] sm:$0xff] %v933_v27 }
 0x140   : > { %938 = vst [vmem:[%s403_s14 + $0x18] sm:$0xff] %v934_v28 }
 0x141 PF: > { %s16_s25 = sadd.s32 1, %s1362_s25   ;;  %s1571_s21 = smov %s1354_s23 }
 0x142   : > { %p13_p10 = scmp.ge.s32.totalorder %s16_s25, 34   ;;  %s1572_s22 = smov %s1358_s24 }
 0x143   : > { %s1573_s23 = smov %s1576_s26  ;;  %s1574_s24 = smov %s1580_s27 }
 0x144   :  { %15 = sbr.rel (!%p13_p10) target bundleno = 3 (0x3), region = 85 }

</bundles_post_ra>
